<compile_context>
chip_gen: v7x
topology: tpu7x:2x2x1
jax: 0.10.0
libtpu: 0.0.40
codegen_flags: <defaults>
</compile_context>

<pallas_src>
import math

import jax
import jax.numpy as jnp
from jax import lax
from jax.experimental import pallas as pl
from jax.experimental.pallas import tpu as pltpu

# Both the in-kernel dots and the pure-JAX reference must run true-f32 matmuls;
# the TPU default matmul precision (single-pass bf16 on the MXU) introduces
# ~1e-3 relative error, which is what tripped the previous parity check.
jax.config.update("jax_default_matmul_precision", "highest")


# ----------------------------- Fused kernel ---------------------------------
def _make_fused_kernel(num_heads, head_dim, q_tile, Lk):
    H, Dh = num_heads, head_dim
    half = Dh // 2
    scale = 1.0 / math.sqrt(Dh)

    def kernel(hs_ref, enc_ref, wq_ref, bq_ref, wk_ref, bk_ref, wv_ref, bv_ref,
               cosq_ref, sinq_ref, cosk_ref, sink_ref, mask_ref, o_ref):
        x_q = hs_ref[0]             # (q_tile, hidden)
        x_kv = enc_ref[0]           # (Lk, d_kv)

        # Fused Q/K/V projections.  Weights are pre-transposed to (Din, H*Dh) in
        # the wrapper, so the MXU contracts directly (no in-kernel .T).
        # TODO(synk): cast MXU operands to bf16 for production (see header).
        q_m = jnp.dot(x_q, wq_ref[...], preferred_element_type=jnp.float32) + bq_ref[...]
        k_m = jnp.dot(x_kv, wk_ref[...], preferred_element_type=jnp.float32) + bk_ref[...]
        v_m = jnp.dot(x_kv, wv_ref[...], preferred_element_type=jnp.float32) + bv_ref[...]

        # Hoisted out of the head loop: pre-sliced, sign-folded RoPE tables and
        # the additive-mask broadcast (done once, not H times).
        cos_q = cosq_ref[...]       # (q_tile, Dh)
        sin_q = sinq_ref[...]       # sign-folded: cat(-sin_half, sin_half)
        cos_k = cosk_ref[...]       # (Lk, Dh)
        sin_k = sink_ref[...]
        mask2d = jnp.broadcast_to(mask_ref[0], (q_tile, Lk))

        for h in range(H):          # small static head loop, all in VMEM/vregs
            sl = slice(h * Dh, (h + 1) * Dh)
            qh = q_m[:, sl] * scale            # scale before RoPE (torch order)
            kh = k_m[:, sl]
            vh = v_m[:, sl]

            # RoPE: x*cos + rotate_half(x)*sin == x*cos + roll(x, Dh/2)*sin_signed.
            # Static roll lowers to a single lane swap; the negate lives in the
            # pre-signed sin table (pltpu.roll is a drop-in XLU alternative).
            qh = qh * cos_q + jnp.roll(qh, half, axis=-1) * sin_q
            kh = kh * cos_k + jnp.roll(kh, half, axis=-1) * sin_k

            # scores: contract last dims directly (no transpose of K)
            s = lax.dot_general(qh, kh, (((1,), (1,)), ((), ())),
                                preferred_element_type=jnp.float32)  # (q_tile, Lk)
            s = s + mask2d
            s = s - jnp.max(s, axis=-1, keepdims=True)
            p = jnp.exp(s)
            # Exact normalization (approx reciprocal costs ~2^-12 rel error,
            # which the parity check against the f32 reference does not allow).
            p = p / jnp.sum(p, axis=-1, keepdims=True)

            ctx = jnp.dot(p, vh, preferred_element_type=jnp.float32)
            # Per-head store straight into the merged-head lane slice of o_ref:
            # no ctx_parts list / concatenate relayout, fewer live temporaries.
            o_ref[0, :, sl] = ctx.astype(o_ref.dtype)

    return kernel


# ----------------------------- Module wrapper --------------------------------
def rotary_tables(L, Dh):
    """Exactly RotaryEmbedding._update_cos_sin_tables, returned as (L, Dh)."""
    inv_freq = 1.0 / (10000.0 ** (jnp.arange(0, Dh, 2, dtype=jnp.float32) / Dh))
    t = jnp.arange(L, dtype=jnp.float32)
    freqs = jnp.outer(t, inv_freq)                       # (L, Dh/2)
    emb = jnp.concatenate([freqs, freqs], axis=-1)       # (L, Dh)
    return jnp.cos(emb), jnp.sin(emb)


def qt_self_attention(hidden_states, encoder_hidden_states, encoder_attention_mask,
                      params, num_heads):
    B, Lq, hidden = hidden_states.shape
    _, Lk, d_kv = encoder_hidden_states.shape
    assert hidden % num_heads == 0, "hidden_size must be divisible by num_attention_heads"
    Dh = hidden // num_heads
    assert Dh % 2 == 0, "rotary embedding requires an even attention_head_size"
    W = num_heads * Dh
    half = Dh // 2
    Lmax = max(Lq, Lk)

    # Query-length tiling: second "parallel" grid axis (v7x megacore upside even
    # at B == 1).  A single tile at the test shapes.
    q_tile = Lq if Lq <= 128 else 128
    assert Lq % q_tile == 0
    nq = Lq // q_tile

    # Pre-transpose weights ONCE to (Din, Dout); biases to (1, Dout).
    wq_t = params["Wq"].T
    wk_t = params["Wk"].T
    wv_t = params["Wv"].T
    bq = params["bq"].reshape(1, W)
    bk = params["bk"].reshape(1, W)
    bv = params["bv"].reshape(1, W)

    # cos/sin sliced to the rows each side needs; rotate_half's sign folded into
    # the sin table so the kernel only needs a roll.
    cos, sin = rotary_tables(Lmax, Dh)
    sin_signed = jnp.concatenate([-sin[:, :half], sin[:, half:]], axis=-1)
    cos_q, sin_q = cos[:Lq], sin_signed[:Lq]
    cos_k, sin_k = cos[:Lk], sin_signed[:Lk]

    mask = encoder_attention_mask.reshape(B, 1, Lk)      # additive mask per batch

    kernel = _make_fused_kernel(num_heads, Dh, q_tile, Lk)

    # Grid-invariant operands (weights / biases / K-side RoPE tables).
    # TODO(synk): add pipeline_mode=pl.Buffered(1) here on VMEM-tight chips.
    def const(shape):
        return pl.BlockSpec(shape, lambda b, qi: tuple(0 for _ in shape))

    out = pl.pallas_call(
        kernel,
        out_shape=jax.ShapeDtypeStruct((B, Lq, W), hidden_states.dtype),
        grid_spec=pltpu.PrefetchScalarGridSpec(
            num_scalar_prefetch=0,
            grid=(B, nq),
            in_specs=[
                pl.BlockSpec((1, q_tile, hidden), lambda b, qi: (b, qi, 0)),  # hidden_states
                pl.BlockSpec((1, Lk, d_kv), lambda b, qi: (b, 0, 0)),         # encoder states
                const((hidden, W)), const((1, W)),                            # Wq^T, bq
                const((d_kv, W)), const((1, W)),                              # Wk^T, bk
                const((d_kv, W)), const((1, W)),                              # Wv^T, bv
                pl.BlockSpec((q_tile, Dh), lambda b, qi: (qi, 0)),            # cos_q
                pl.BlockSpec((q_tile, Dh), lambda b, qi: (qi, 0)),            # sin_q (signed)
                const((Lk, Dh)), const((Lk, Dh)),                             # cos_k, sin_k (signed)
                pl.BlockSpec((1, 1, Lk), lambda b, qi: (b, 0, 0)),            # additive mask
            ],
            out_specs=pl.BlockSpec((1, q_tile, W), lambda b, qi: (b, qi, 0)),
        ),
        compiler_params=pltpu.CompilerParams(
            dimension_semantics=("parallel", "parallel")),
    )(hidden_states, encoder_hidden_states, wq_t, bq, wk_t, bk, wv_t, bv,
      cos_q, sin_q, cos_k, sin_k, mask)
    return out


# ----------------------------- Pure-JAX reference ----------------------------
def _rotate_half_ref(x):
    x1, x2 = jnp.split(x, 2, axis=-1)
    return jnp.concatenate([-x2, x1], axis=-1)


def reference_forward(hidden_states, encoder_hidden_states, mask, params, num_heads):
    B, Lq, hidden = hidden_states.shape
    Lk = encoder_hidden_states.shape[1]
    Dh = hidden // num_heads
    hi = lax.Precision.HIGHEST

    q = jnp.matmul(hidden_states, params["Wq"].T, precision=hi) + params["bq"]
    k = jnp.matmul(encoder_hidden_states, params["Wk"].T, precision=hi) + params["bk"]
    v = jnp.matmul(encoder_hidden_states, params["Wv"].T, precision=hi) + params["bv"]

    q = q.reshape(B, Lq, num_heads, Dh).transpose(0, 2, 1, 3) * (Dh ** -0.5)
    k = k.reshape(B, Lk, num_heads, Dh).transpose(0, 2, 1, 3)
    v = v.reshape(B, Lk, num_heads, Dh).transpose(0, 2, 1, 3)

    cos, sin = rotary_tables(max(Lq, Lk), Dh)
    q = q * cos[:Lq] + _rotate_half_ref(q) * sin[:Lq]
    k = k * cos[:Lk] + _rotate_half_ref(k) * sin[:Lk]

    scores = jnp.einsum("bhqd,bhkd->bhqk", q, k, precision=hi) + mask
    probs = jax.nn.softmax(scores, axis=-1)
    ctx = jnp.einsum("bhqk,bhkd->bhqd", probs, v, precision=hi)
    return ctx.transpose(0, 2, 1, 3).reshape(B, Lq, num_heads * Dh)


# ----------------------------- Main ------------------------------------------
if __name__ == "__main__":
    B, Lq, Lk = 2, 8, 8
    hidden_size = 32           # config.hidden_size
    qt_from_hidden_size = 16   # config.qt_from_hidden_size (cross_attn=True)
    num_heads = 4              # config.num_attention_heads

    key = jax.random.PRNGKey(0)
    ks = jax.random.split(key, 8)
    hidden_states = jax.random.normal(ks[0], (B, Lq, hidden_size), jnp.float32)
    encoder_hidden_states = jax.random.normal(ks[1], (B, Lk, qt_from_hidden_size), jnp.float32)

    params = {
        "Wq": 0.1 * jax.random.normal(ks[2], (hidden_size, hidden_size), jnp.float32),
        "bq": 0.01 * jax.random.normal(ks[3], (hidden_size,), jnp.float32),
        "Wk": 0.1 * jax.random.normal(ks[4], (hidden_size, qt_from_hidden_size), jnp.float32),
        "bk": 0.01 * jax.random.normal(ks[5], (hidden_size,), jnp.float32),
        "Wv": 0.1 * jax.random.normal(ks[6], (hidden_size, qt_from_hidden_size), jnp.float32),
        "bv": 0.01 * jax.random.normal(ks[7], (hidden_size,), jnp.float32),
    }

    # additive encoder attention mask (B, 1, 1, Lk): last 2 key positions of batch 1 masked
    valid_len = jnp.array([Lk, Lk - 2])[:, None]
    enc_mask = jnp.where(jnp.arange(Lk)[None, :] < valid_len, 0.0, -1e9).astype(jnp.float32)
    enc_mask = enc_mask[:, None, None, :]

    out = qt_self_attention(hidden_states, encoder_hidden_states, enc_mask, params, num_heads)
    out = jax.block_until_ready(out)

    ref = reference_forward(hidden_states, encoder_hidden_states, enc_mask, params, num_heads)
    assert out.shape == (B, Lq, hidden_size), out.shape
    assert jnp.allclose(out, ref, atol=1e-3, rtol=1e-3), \
        f"max abs err = {float(jnp.max(jnp.abs(out - ref)))}"

    # TODO(synk): attention_probs dropout is identity at inference; the
    # 'relative_key' / 'relative_key_query' branches and past_key_value /
    # head_mask / output_attentions paths are not exercised here.
    print("KERNEL_OK")
</pallas_src>

<mosaic_0001>
module attributes {stable_mosaic.version = 11 : i64} {
  func.func @kernel(%arg0: i32, %arg1: i32, %arg2: memref<1x8x32xf32, #tpu.memory_space<vmem>>, %arg3: memref<1x8x16xf32, #tpu.memory_space<vmem>>, %arg4: memref<32x32xf32, #tpu.memory_space<vmem>>, %arg5: memref<1x32xf32, #tpu.memory_space<vmem>>, %arg6: memref<16x32xf32, #tpu.memory_space<vmem>>, %arg7: memref<1x32xf32, #tpu.memory_space<vmem>>, %arg8: memref<16x32xf32, #tpu.memory_space<vmem>>, %arg9: memref<1x32xf32, #tpu.memory_space<vmem>>, %arg10: memref<8x8xf32, #tpu.memory_space<vmem>>, %arg11: memref<8x8xf32, #tpu.memory_space<vmem>>, %arg12: memref<8x8xf32, #tpu.memory_space<vmem>>, %arg13: memref<8x8xf32, #tpu.memory_space<vmem>>, %arg14: memref<1x1x8xf32, #tpu.memory_space<vmem>>, %arg15: memref<1x8x32xf32, #tpu.memory_space<vmem>>) attributes {dimension_semantics = [#tpu.dimension_semantics<parallel>, #tpu.dimension_semantics<parallel>], iteration_bounds = array<i64: 2, 1>, scalar_prefetch = 0 : i64, scratch_operands = 0 : i64, tpu.core_type = #tpu.core_type<tc>, window_params = [{transform_indices = @transform_0, window_bounds = array<i64: 1, 8, 32>}, {transform_indices = @transform_1, window_bounds = array<i64: 1, 8, 16>}, {pipeline_mode = #tpu.pipeline_mode<synchronous>, transform_indices = @transform_2, window_bounds = array<i64: 32, 32>}, {pipeline_mode = #tpu.pipeline_mode<synchronous>, transform_indices = @transform_3, window_bounds = array<i64: 1, 32>}, {pipeline_mode = #tpu.pipeline_mode<synchronous>, transform_indices = @transform_4, window_bounds = array<i64: 16, 32>}, {pipeline_mode = #tpu.pipeline_mode<synchronous>, transform_indices = @transform_5, window_bounds = array<i64: 1, 32>}, {pipeline_mode = #tpu.pipeline_mode<synchronous>, transform_indices = @transform_6, window_bounds = array<i64: 16, 32>}, {pipeline_mode = #tpu.pipeline_mode<synchronous>, transform_indices = @transform_7, window_bounds = array<i64: 1, 32>}, {transform_indices = @transform_8, window_bounds = array<i64: 8, 8>}, {transform_indices = @transform_9, window_bounds = array<i64: 8, 8>}, {pipeline_mode = #tpu.pipeline_mode<synchronous>, transform_indices = @transform_10, window_bounds = array<i64: 8, 8>}, {pipeline_mode = #tpu.pipeline_mode<synchronous>, transform_indices = @transform_11, window_bounds = array<i64: 8, 8>}, {transform_indices = @transform_12, window_bounds = array<i64: 1, 1, 8>}, {transform_indices = @transform_13, window_bounds = array<i64: 1, 8, 32>}]} {
    %c0 = arith.constant 0 : index
    %c0_0 = arith.constant 0 : index
    %c0_1 = arith.constant 0 : index
    %0 = vector.load %arg2[%c0, %c0_0, %c0_1] : memref<1x8x32xf32, #tpu.memory_space<vmem>>, vector<1x8x32xf32>
    %1 = vector.shape_cast %0 : vector<1x8x32xf32> to vector<8x32xf32>
    %c0_2 = arith.constant 0 : index
    %c0_3 = arith.constant 0 : index
    %c0_4 = arith.constant 0 : index
    %2 = vector.load %arg3[%c0_2, %c0_3, %c0_4] : memref<1x8x16xf32, #tpu.memory_space<vmem>>, vector<1x8x16xf32>
    %3 = vector.shape_cast %2 : vector<1x8x16xf32> to vector<8x16xf32>
    %c0_5 = arith.constant 0 : index
    %c0_6 = arith.constant 0 : index
    %4 = vector.load %arg4[%c0_5, %c0_6] : memref<32x32xf32, #tpu.memory_space<vmem>>, vector<32x32xf32>
    %cst = arith.constant dense<0.000000e+00> : vector<8x32xf32>
    %5 = tpu.matmul %1, %4, %cst {dimension_numbers = #tpu.dot_dimension_numbers<[1], [0], [0], [1], [0, 0, 1, 1], [], []>, precision = #tpu.contract_precision<fp32>} : vector<8x32xf32>, vector<32x32xf32>, vector<8x32xf32> -> vector<8x32xf32>
    %c0_7 = arith.constant 0 : index
    %c0_8 = arith.constant 0 : index
    %6 = vector.load %arg5[%c0_7, %c0_8] : memref<1x32xf32, #tpu.memory_space<vmem>>, vector<1x32xf32>
    %7 = vector.broadcast %6 : vector<1x32xf32> to vector<8x32xf32>
    %8 = arith.addf %5, %7 : vector<8x32xf32>
    %c0_9 = arith.constant 0 : index
    %c0_10 = arith.constant 0 : index
    %9 = vector.load %arg6[%c0_9, %c0_10] : memref<16x32xf32, #tpu.memory_space<vmem>>, vector<16x32xf32>
    %cst_11 = arith.constant dense<0.000000e+00> : vector<8x32xf32>
    %10 = tpu.matmul %3, %9, %cst_11 {dimension_numbers = #tpu.dot_dimension_numbers<[1], [0], [0], [1], [0, 0, 1, 1], [], []>, precision = #tpu.contract_precision<fp32>} : vector<8x16xf32>, vector<16x32xf32>, vector<8x32xf32> -> vector<8x32xf32>
    %c0_12 = arith.constant 0 : index
    %c0_13 = arith.constant 0 : index
    %11 = vector.load %arg7[%c0_12, %c0_13] : memref<1x32xf32, #tpu.memory_space<vmem>>, vector<1x32xf32>
    %12 = vector.broadcast %11 : vector<1x32xf32> to vector<8x32xf32>
    %13 = arith.addf %10, %12 : vector<8x32xf32>
    %c0_14 = arith.constant 0 : index
    %c0_15 = arith.constant 0 : index
    %14 = vector.load %arg8[%c0_14, %c0_15] : memref<16x32xf32, #tpu.memory_space<vmem>>, vector<16x32xf32>
    %cst_16 = arith.constant dense<0.000000e+00> : vector<8x32xf32>
    %15 = tpu.matmul %3, %14, %cst_16 {dimension_numbers = #tpu.dot_dimension_numbers<[1], [0], [0], [1], [0, 0, 1, 1], [], []>, precision = #tpu.contract_precision<fp32>} : vector<8x16xf32>, vector<16x32xf32>, vector<8x32xf32> -> vector<8x32xf32>
    %c0_17 = arith.constant 0 : index
    %c0_18 = arith.constant 0 : index
    %16 = vector.load %arg9[%c0_17, %c0_18] : memref<1x32xf32, #tpu.memory_space<vmem>>, vector<1x32xf32>
    %17 = vector.broadcast %16 : vector<1x32xf32> to vector<8x32xf32>
    %18 = arith.addf %15, %17 : vector<8x32xf32>
    %c0_19 = arith.constant 0 : index
    %c0_20 = arith.constant 0 : index
    %19 = vector.load %arg10[%c0_19, %c0_20] : memref<8x8xf32, #tpu.memory_space<vmem>>, vector<8x8xf32>
    %c0_21 = arith.constant 0 : index
    %c0_22 = arith.constant 0 : index
    %20 = vector.load %arg11[%c0_21, %c0_22] : memref<8x8xf32, #tpu.memory_space<vmem>>, vector<8x8xf32>
    %c0_23 = arith.constant 0 : index
    %c0_24 = arith.constant 0 : index
    %21 = vector.load %arg12[%c0_23, %c0_24] : memref<8x8xf32, #tpu.memory_space<vmem>>, vector<8x8xf32>
    %c0_25 = arith.constant 0 : index
    %c0_26 = arith.constant 0 : index
    %22 = vector.load %arg13[%c0_25, %c0_26] : memref<8x8xf32, #tpu.memory_space<vmem>>, vector<8x8xf32>
    %c0_27 = arith.constant 0 : index
    %c0_28 = arith.constant 0 : index
    %c0_29 = arith.constant 0 : index
    %23 = vector.load %arg14[%c0_27, %c0_28, %c0_29] : memref<1x1x8xf32, #tpu.memory_space<vmem>>, vector<1x1x8xf32>
    %24 = vector.shape_cast %23 : vector<1x1x8xf32> to vector<1x8xf32>
    %25 = vector.shape_cast %24 : vector<1x8xf32> to vector<1x8xf32>
    %26 = vector.broadcast %25 : vector<1x8xf32> to vector<8x8xf32>
    %27 = vector.extract_strided_slice %8 {offsets = [0, 0], sizes = [8, 8], strides = [1, 1]} : vector<8x32xf32> to vector<8x8xf32>
    %cst_30 = arith.constant 0.353553385 : f32
    %28 = vector.broadcast %cst_30 : f32 to vector<8x8xf32>
    %29 = arith.mulf %27, %28 : vector<8x8xf32>
    %30 = vector.extract_strided_slice %13 {offsets = [0, 0], sizes = [8, 8], strides = [1, 1]} : vector<8x32xf32> to vector<8x8xf32>
    %31 = vector.extract_strided_slice %18 {offsets = [0, 0], sizes = [8, 8], strides = [1, 1]} : vector<8x32xf32> to vector<8x8xf32>
    %32 = arith.mulf %29, %19 : vector<8x8xf32>
    %33 = vector.extract_strided_slice %29 {offsets = [0, 4], sizes = [8, 4], strides = [1, 1]} : vector<8x8xf32> to vector<8x4xf32>
    %34 = vector.extract_strided_slice %29 {offsets = [0, 0], sizes = [8, 4], strides = [1, 1]} : vector<8x8xf32> to vector<8x4xf32>
    %35 = tpu.concatenate %33, %34 in 1 : vector<8x4xf32>, vector<8x4xf32> -> vector<8x8xf32>
    %36 = arith.mulf %35, %20 : vector<8x8xf32>
    %37 = arith.addf %32, %36 : vector<8x8xf32>
    %38 = arith.mulf %30, %21 : vector<8x8xf32>
    %39 = vector.extract_strided_slice %30 {offsets = [0, 4], sizes = [8, 4], strides = [1, 1]} : vector<8x8xf32> to vector<8x4xf32>
    %40 = vector.extract_strided_slice %30 {offsets = [0, 0], sizes = [8, 4], strides = [1, 1]} : vector<8x8xf32> to vector<8x4xf32>
    %41 = tpu.concatenate %39, %40 in 1 : vector<8x4xf32>, vector<8x4xf32> -> vector<8x8xf32>
    %42 = arith.mulf %41, %22 : vector<8x8xf32>
    %43 = arith.addf %38, %42 : vector<8x8xf32>
    %cst_31 = arith.constant dense<0.000000e+00> : vector<8x8xf32>
    %44 = tpu.matmul %37, %43, %cst_31 {dimension_numbers = #tpu.dot_dimension_numbers<[1], [1], [0], [0], [0, 0, 1, 0], [], []>, precision = #tpu.contract_precision<fp32>} : vector<8x8xf32>, vector<8x8xf32>, vector<8x8xf32> -> vector<8x8xf32>
    %45 = arith.addf %44, %26 : vector<8x8xf32>
    %cst_32 = arith.constant dense<0xFF800000> : vector<8xf32>
    %46 = vector.multi_reduction <maximumf>, %45, %cst_32 [1] : vector<8x8xf32> to vector<8xf32>
    %47 = vector.shape_cast %46 : vector<8xf32> to vector<8x1xf32>
    %48 = vector.broadcast %47 : vector<8x1xf32> to vector<8x8xf32>
    %49 = arith.subf %45, %48 : vector<8x8xf32>
    %50 = math.exp %49 : vector<8x8xf32>
    %cst_33 = arith.constant dense<0.000000e+00> : vector<8xf32>
    %51 = vector.multi_reduction <add>, %50, %cst_33 [1] : vector<8x8xf32> to vector<8xf32>
    %52 = vector.shape_cast %51 : vector<8xf32> to vector<8x1xf32>
    %53 = vector.broadcast %52 : vector<8x1xf32> to vector<8x8xf32>
    %54 = arith.divf %50, %53 : vector<8x8xf32>
    %cst_34 = arith.constant dense<0.000000e+00> : vector<8x8xf32>
    %55 = tpu.matmul %54, %31, %cst_34 {dimension_numbers = #tpu.dot_dimension_numbers<[1], [0], [0], [1], [0, 0, 1, 1], [], []>, precision = #tpu.contract_precision<fp32>} : vector<8x8xf32>, vector<8x8xf32>, vector<8x8xf32> -> vector<8x8xf32>
    %c0_35 = arith.constant 0 : index
    %c0_36 = arith.constant 0 : index
    %c0_37 = arith.constant 0 : index
    %56 = vector.load %arg15[%c0_35, %c0_36, %c0_37] : memref<1x8x32xf32, #tpu.memory_space<vmem>>, vector<1x8x8xf32>
    %57 = vector.shape_cast %56 : vector<1x8x8xf32> to vector<8x8xf32>
    %58 = vector.shape_cast %55 : vector<8x8xf32> to vector<1x8x8xf32>
    tpu.vector_store %arg15[%c0_35, %c0_36, %c0_37], %58 {strides = array<i32>} : memref<1x8x32xf32, #tpu.memory_space<vmem>>, vector<1x8x8xf32>,
    %59 = vector.extract_strided_slice %8 {offsets = [0, 8], sizes = [8, 8], strides = [1, 1]} : vector<8x32xf32> to vector<8x8xf32>
    %cst_38 = arith.constant 0.353553385 : f32
    %60 = vector.broadcast %cst_38 : f32 to vector<8x8xf32>
    %61 = arith.mulf %59, %60 : vector<8x8xf32>
    %62 = vector.extract_strided_slice %13 {offsets = [0, 8], sizes = [8, 8], strides = [1, 1]} : vector<8x32xf32> to vector<8x8xf32>
    %63 = vector.extract_strided_slice %18 {offsets = [0, 8], sizes = [8, 8], strides = [1, 1]} : vector<8x32xf32> to vector<8x8xf32>
    %64 = arith.mulf %61, %19 : vector<8x8xf32>
    %65 = vector.extract_strided_slice %61 {offsets = [0, 4], sizes = [8, 4], strides = [1, 1]} : vector<8x8xf32> to vector<8x4xf32>
    %66 = vector.extract_strided_slice %61 {offsets = [0, 0], sizes = [8, 4], strides = [1, 1]} : vector<8x8xf32> to vector<8x4xf32>
    %67 = tpu.concatenate %65, %66 in 1 : vector<8x4xf32>, vector<8x4xf32> -> vector<8x8xf32>
    %68 = arith.mulf %67, %20 : vector<8x8xf32>
    %69 = arith.addf %64, %68 : vector<8x8xf32>
    %70 = arith.mulf %62, %21 : vector<8x8xf32>
    %71 = vector.extract_strided_slice %62 {offsets = [0, 4], sizes = [8, 4], strides = [1, 1]} : vector<8x8xf32> to vector<8x4xf32>
    %72 = vector.extract_strided_slice %62 {offsets = [0, 0], sizes = [8, 4], strides = [1, 1]} : vector<8x8xf32> to vector<8x4xf32>
    %73 = tpu.concatenate %71, %72 in 1 : vector<8x4xf32>, vector<8x4xf32> -> vector<8x8xf32>
    %74 = arith.mulf %73, %22 : vector<8x8xf32>
    %75 = arith.addf %70, %74 : vector<8x8xf32>
    %cst_39 = arith.constant dense<0.000000e+00> : vector<8x8xf32>
    %76 = tpu.matmul %69, %75, %cst_39 {dimension_numbers = #tpu.dot_dimension_numbers<[1], [1], [0], [0], [0, 0, 1, 0], [], []>, precision = #tpu.contract_precision<fp32>} : vector<8x8xf32>, vector<8x8xf32>, vector<8x8xf32> -> vector<8x8xf32>
    %77 = arith.addf %76, %26 : vector<8x8xf32>
    %cst_40 = arith.constant dense<0xFF800000> : vector<8xf32>
    %78 = vector.multi_reduction <maximumf>, %77, %cst_40 [1] : vector<8x8xf32> to vector<8xf32>
    %79 = vector.shape_cast %78 : vector<8xf32> to vector<8x1xf32>
    %80 = vector.broadcast %79 : vector<8x1xf32> to vector<8x8xf32>
    %81 = arith.subf %77, %80 : vector<8x8xf32>
    %82 = math.exp %81 : vector<8x8xf32>
    %cst_41 = arith.constant dense<0.000000e+00> : vector<8xf32>
    %83 = vector.multi_reduction <add>, %82, %cst_41 [1] : vector<8x8xf32> to vector<8xf32>
    %84 = vector.shape_cast %83 : vector<8xf32> to vector<8x1xf32>
    %85 = vector.broadcast %84 : vector<8x1xf32> to vector<8x8xf32>
    %86 = arith.divf %82, %85 : vector<8x8xf32>
    %cst_42 = arith.constant dense<0.000000e+00> : vector<8x8xf32>
    %87 = tpu.matmul %86, %63, %cst_42 {dimension_numbers = #tpu.dot_dimension_numbers<[1], [0], [0], [1], [0, 0, 1, 1], [], []>, precision = #tpu.contract_precision<fp32>} : vector<8x8xf32>, vector<8x8xf32>, vector<8x8xf32> -> vector<8x8xf32>
    %c0_43 = arith.constant 0 : index
    %c0_44 = arith.constant 0 : index
    %c8 = arith.constant 8 : index
    %88 = vector.load %arg15[%c0_43, %c0_44, %c8] : memref<1x8x32xf32, #tpu.memory_space<vmem>>, vector<1x8x8xf32>
    %89 = vector.shape_cast %88 : vector<1x8x8xf32> to vector<8x8xf32>
    %90 = vector.shape_cast %87 : vector<8x8xf32> to vector<1x8x8xf32>
    tpu.vector_store %arg15[%c0_43, %c0_44, %c8], %90 {strides = array<i32>} : memref<1x8x32xf32, #tpu.memory_space<vmem>>, vector<1x8x8xf32>,
    %91 = vector.extract_strided_slice %8 {offsets = [0, 16], sizes = [8, 8], strides = [1, 1]} : vector<8x32xf32> to vector<8x8xf32>
    %cst_45 = arith.constant 0.353553385 : f32
    %92 = vector.broadcast %cst_45 : f32 to vector<8x8xf32>
    %93 = arith.mulf %91, %92 : vector<8x8xf32>
    %94 = vector.extract_strided_slice %13 {offsets = [0, 16], sizes = [8, 8], strides = [1, 1]} : vector<8x32xf32> to vector<8x8xf32>
    %95 = vector.extract_strided_slice %18 {offsets = [0, 16], sizes = [8, 8], strides = [1, 1]} : vector<8x32xf32> to vector<8x8xf32>
    %96 = arith.mulf %93, %19 : vector<8x8xf32>
    %97 = vector.extract_strided_slice %93 {offsets = [0, 4], sizes = [8, 4], strides = [1, 1]} : vector<8x8xf32> to vector<8x4xf32>
    %98 = vector.extract_strided_slice %93 {offsets = [0, 0], sizes = [8, 4], strides = [1, 1]} : vector<8x8xf32> to vector<8x4xf32>
    %99 = tpu.concatenate %97, %98 in 1 : vector<8x4xf32>, vector<8x4xf32> -> vector<8x8xf32>
    %100 = arith.mulf %99, %20 : vector<8x8xf32>
    %101 = arith.addf %96, %100 : vector<8x8xf32>
    %102 = arith.mulf %94, %21 : vector<8x8xf32>
    %103 = vector.extract_strided_slice %94 {offsets = [0, 4], sizes = [8, 4], strides = [1, 1]} : vector<8x8xf32> to vector<8x4xf32>
    %104 = vector.extract_strided_slice %94 {offsets = [0, 0], sizes = [8, 4], strides = [1, 1]} : vector<8x8xf32> to vector<8x4xf32>
    %105 = tpu.concatenate %103, %104 in 1 : vector<8x4xf32>, vector<8x4xf32> -> vector<8x8xf32>
    %106 = arith.mulf %105, %22 : vector<8x8xf32>
    %107 = arith.addf %102, %106 : vector<8x8xf32>
    %cst_46 = arith.constant dense<0.000000e+00> : vector<8x8xf32>
    %108 = tpu.matmul %101, %107, %cst_46 {dimension_numbers = #tpu.dot_dimension_numbers<[1], [1], [0], [0], [0, 0, 1, 0], [], []>, precision = #tpu.contract_precision<fp32>} : vector<8x8xf32>, vector<8x8xf32>, vector<8x8xf32> -> vector<8x8xf32>
    %109 = arith.addf %108, %26 : vector<8x8xf32>
    %cst_47 = arith.constant dense<0xFF800000> : vector<8xf32>
    %110 = vector.multi_reduction <maximumf>, %109, %cst_47 [1] : vector<8x8xf32> to vector<8xf32>
    %111 = vector.shape_cast %110 : vector<8xf32> to vector<8x1xf32>
    %112 = vector.broadcast %111 : vector<8x1xf32> to vector<8x8xf32>
    %113 = arith.subf %109, %112 : vector<8x8xf32>
    %114 = math.exp %113 : vector<8x8xf32>
    %cst_48 = arith.constant dense<0.000000e+00> : vector<8xf32>
    %115 = vector.multi_reduction <add>, %114, %cst_48 [1] : vector<8x8xf32> to vector<8xf32>
    %116 = vector.shape_cast %115 : vector<8xf32> to vector<8x1xf32>
    %117 = vector.broadcast %116 : vector<8x1xf32> to vector<8x8xf32>
    %118 = arith.divf %114, %117 : vector<8x8xf32>
    %cst_49 = arith.constant dense<0.000000e+00> : vector<8x8xf32>
    %119 = tpu.matmul %118, %95, %cst_49 {dimension_numbers = #tpu.dot_dimension_numbers<[1], [0], [0], [1], [0, 0, 1, 1], [], []>, precision = #tpu.contract_precision<fp32>} : vector<8x8xf32>, vector<8x8xf32>, vector<8x8xf32> -> vector<8x8xf32>
    %c0_50 = arith.constant 0 : index
    %c0_51 = arith.constant 0 : index
    %c16 = arith.constant 16 : index
    %120 = vector.load %arg15[%c0_50, %c0_51, %c16] : memref<1x8x32xf32, #tpu.memory_space<vmem>>, vector<1x8x8xf32>
    %121 = vector.shape_cast %120 : vector<1x8x8xf32> to vector<8x8xf32>
    %122 = vector.shape_cast %119 : vector<8x8xf32> to vector<1x8x8xf32>
    tpu.vector_store %arg15[%c0_50, %c0_51, %c16], %122 {strides = array<i32>} : memref<1x8x32xf32, #tpu.memory_space<vmem>>, vector<1x8x8xf32>,
    %123 = vector.extract_strided_slice %8 {offsets = [0, 24], sizes = [8, 8], strides = [1, 1]} : vector<8x32xf32> to vector<8x8xf32>
    %cst_52 = arith.constant 0.353553385 : f32
    %124 = vector.broadcast %cst_52 : f32 to vector<8x8xf32>
    %125 = arith.mulf %123, %124 : vector<8x8xf32>
    %126 = vector.extract_strided_slice %13 {offsets = [0, 24], sizes = [8, 8], strides = [1, 1]} : vector<8x32xf32> to vector<8x8xf32>
    %127 = vector.extract_strided_slice %18 {offsets = [0, 24], sizes = [8, 8], strides = [1, 1]} : vector<8x32xf32> to vector<8x8xf32>
    %128 = arith.mulf %125, %19 : vector<8x8xf32>
    %129 = vector.extract_strided_slice %125 {offsets = [0, 4], sizes = [8, 4], strides = [1, 1]} : vector<8x8xf32> to vector<8x4xf32>
    %130 = vector.extract_strided_slice %125 {offsets = [0, 0], sizes = [8, 4], strides = [1, 1]} : vector<8x8xf32> to vector<8x4xf32>
    %131 = tpu.concatenate %129, %130 in 1 : vector<8x4xf32>, vector<8x4xf32> -> vector<8x8xf32>
    %132 = arith.mulf %131, %20 : vector<8x8xf32>
    %133 = arith.addf %128, %132 : vector<8x8xf32>
    %134 = arith.mulf %126, %21 : vector<8x8xf32>
    %135 = vector.extract_strided_slice %126 {offsets = [0, 4], sizes = [8, 4], strides = [1, 1]} : vector<8x8xf32> to vector<8x4xf32>
    %136 = vector.extract_strided_slice %126 {offsets = [0, 0], sizes = [8, 4], strides = [1, 1]} : vector<8x8xf32> to vector<8x4xf32>
    %137 = tpu.concatenate %135, %136 in 1 : vector<8x4xf32>, vector<8x4xf32> -> vector<8x8xf32>
    %138 = arith.mulf %137, %22 : vector<8x8xf32>
    %139 = arith.addf %134, %138 : vector<8x8xf32>
    %cst_53 = arith.constant dense<0.000000e+00> : vector<8x8xf32>
    %140 = tpu.matmul %133, %139, %cst_53 {dimension_numbers = #tpu.dot_dimension_numbers<[1], [1], [0], [0], [0, 0, 1, 0], [], []>, precision = #tpu.contract_precision<fp32>} : vector<8x8xf32>, vector<8x8xf32>, vector<8x8xf32> -> vector<8x8xf32>
    %141 = arith.addf %140, %26 : vector<8x8xf32>
    %cst_54 = arith.constant dense<0xFF800000> : vector<8xf32>
    %142 = vector.multi_reduction <maximumf>, %141, %cst_54 [1] : vector<8x8xf32> to vector<8xf32>
    %143 = vector.shape_cast %142 : vector<8xf32> to vector<8x1xf32>
    %144 = vector.broadcast %143 : vector<8x1xf32> to vector<8x8xf32>
    %145 = arith.subf %141, %144 : vector<8x8xf32>
    %146 = math.exp %145 : vector<8x8xf32>
    %cst_55 = arith.constant dense<0.000000e+00> : vector<8xf32>
    %147 = vector.multi_reduction <add>, %146, %cst_55 [1] : vector<8x8xf32> to vector<8xf32>
    %148 = vector.shape_cast %147 : vector<8xf32> to vector<8x1xf32>
    %149 = vector.broadcast %148 : vector<8x1xf32> to vector<8x8xf32>
    %150 = arith.divf %146, %149 : vector<8x8xf32>
    %cst_56 = arith.constant dense<0.000000e+00> : vector<8x8xf32>
    %151 = tpu.matmul %150, %127, %cst_56 {dimension_numbers = #tpu.dot_dimension_numbers<[1], [0], [0], [1], [0, 0, 1, 1], [], []>, precision = #tpu.contract_precision<fp32>} : vector<8x8xf32>, vector<8x8xf32>, vector<8x8xf32> -> vector<8x8xf32>
    %c0_57 = arith.constant 0 : index
    %c0_58 = arith.constant 0 : index
    %c24 = arith.constant 24 : index
    %152 = vector.load %arg15[%c0_57, %c0_58, %c24] : memref<1x8x32xf32, #tpu.memory_space<vmem>>, vector<1x8x8xf32>
    %153 = vector.shape_cast %152 : vector<1x8x8xf32> to vector<8x8xf32>
    %154 = vector.shape_cast %151 : vector<8x8xf32> to vector<1x8x8xf32>
    tpu.vector_store %arg15[%c0_57, %c0_58, %c24], %154 {strides = array<i32>} : memref<1x8x32xf32, #tpu.memory_space<vmem>>, vector<1x8x8xf32>,
    return
  }
  func.func @transform_0(%arg0: i32, %arg1: i32) -> (i32, i32, i32) {
    %c0_i32 = arith.constant 0 : i32
    %c0_i32_0 = arith.constant 0 : i32
    return %arg0, %arg1, %c0_i32 : i32, i32, i32
  }
  func.func @transform_1(%arg0: i32, %arg1: i32) -> (i32, i32, i32) {
    %c0_i32 = arith.constant 0 : i32
    %c0_i32_0 = arith.constant 0 : i32
    %c0_i32_1 = arith.constant 0 : i32
    return %arg0, %c0_i32, %c0_i32_0 : i32, i32, i32
  }
  func.func @transform_2(%arg0: i32, %arg1: i32) -> (i32, i32) {
    %c0_i32 = arith.constant 0 : i32
    %c0_i32_0 = arith.constant 0 : i32
    %c0_i32_1 = arith.constant 0 : i32
    return %c0_i32, %c0_i32_0 : i32, i32
  }
  func.func @transform_3(%arg0: i32, %arg1: i32) -> (i32, i32) {
    %c0_i32 = arith.constant 0 : i32
    %c0_i32_0 = arith.constant 0 : i32
    %c0_i32_1 = arith.constant 0 : i32
    return %c0_i32, %c0_i32_0 : i32, i32
  }
  func.func @transform_4(%arg0: i32, %arg1: i32) -> (i32, i32) {
    %c0_i32 = arith.constant 0 : i32
    %c0_i32_0 = arith.constant 0 : i32
    %c0_i32_1 = arith.constant 0 : i32
    return %c0_i32, %c0_i32_0 : i32, i32
  }
  func.func @transform_5(%arg0: i32, %arg1: i32) -> (i32, i32) {
    %c0_i32 = arith.constant 0 : i32
    %c0_i32_0 = arith.constant 0 : i32
    %c0_i32_1 = arith.constant 0 : i32
    return %c0_i32, %c0_i32_0 : i32, i32
  }
  func.func @transform_6(%arg0: i32, %arg1: i32) -> (i32, i32) {
    %c0_i32 = arith.constant 0 : i32
    %c0_i32_0 = arith.constant 0 : i32
    %c0_i32_1 = arith.constant 0 : i32
    return %c0_i32, %c0_i32_0 : i32, i32
  }
  func.func @transform_7(%arg0: i32, %arg1: i32) -> (i32, i32) {
    %c0_i32 = arith.constant 0 : i32
    %c0_i32_0 = arith.constant 0 : i32
    %c0_i32_1 = arith.constant 0 : i32
    return %c0_i32, %c0_i32_0 : i32, i32
  }
  func.func @transform_8(%arg0: i32, %arg1: i32) -> (i32, i32) {
    %c0_i32 = arith.constant 0 : i32
    %c0_i32_0 = arith.constant 0 : i32
    return %arg1, %c0_i32 : i32, i32
  }
  func.func @transform_9(%arg0: i32, %arg1: i32) -> (i32, i32) {
    %c0_i32 = arith.constant 0 : i32
    %c0_i32_0 = arith.constant 0 : i32
    return %arg1, %c0_i32 : i32, i32
  }
  func.func @transform_10(%arg0: i32, %arg1: i32) -> (i32, i32) {
    %c0_i32 = arith.constant 0 : i32
    %c0_i32_0 = arith.constant 0 : i32
    %c0_i32_1 = arith.constant 0 : i32
    return %c0_i32, %c0_i32_0 : i32, i32
  }
  func.func @transform_11(%arg0: i32, %arg1: i32) -> (i32, i32) {
    %c0_i32 = arith.constant 0 : i32
    %c0_i32_0 = arith.constant 0 : i32
    %c0_i32_1 = arith.constant 0 : i32
    return %c0_i32, %c0_i32_0 : i32, i32
  }
  func.func @transform_12(%arg0: i32, %arg1: i32) -> (i32, i32, i32) {
    %c0_i32 = arith.constant 0 : i32
    %c0_i32_0 = arith.constant 0 : i32
    %c0_i32_1 = arith.constant 0 : i32
    return %arg0, %c0_i32, %c0_i32_0 : i32, i32, i32
  }
  func.func @transform_13(%arg0: i32, %arg1: i32) -> (i32, i32, i32) {
    %c0_i32 = arith.constant 0 : i32
    %c0_i32_0 = arith.constant 0 : i32
    return %arg0, %arg1, %c0_i32 : i32, i32, i32
  }
}

</mosaic_0001>

<bundles_post_ra>
// kernel: tpu_custom_call.1
= control target key start
LH: loop header
LB: loop body
LE: loop exit
PB: predicated region body
PF: predicated region fallthrough
CT: control target
= control target key end

     0   :  { %s8181_s0 = inlined_call_operand.hbm [shape: f32[2,8,32], index: 0, kind: input, shape index: {}]   ;;  %s8182_s1 = inlined_call_operand.hbm [shape: f32[2,8,16], index: 1, kind: input, shape index: {}]   ;;  %s8183_s2 = inlined_call_operand.hbm [shape: f32[32,32], index: 2, kind: input, shape index: {}]   ;;  %s8184_s3 = inlined_call_operand.vmem [shape: f32[1,32], index: 3, kind: input, shape index: {}]   ;;  %s8185_s4 = inlined_call_operand.hbm [shape: f32[16,32], index: 4, kind: input, shape index: {}]   ;;  %s8186_s5 = inlined_call_operand.hbm [shape: f32[1,32], index: 5, kind: input, shape index: {}]   ;;  %s8187_s6 = inlined_call_operand.vmem [shape: f32[16,32], index: 6, kind: input, shape index: {}]   ;;  %s8188_s7 = inlined_call_operand.hbm [shape: f32[1,32], index: 7, kind: input, shape index: {}]   ;;  %s8189_s8 = inlined_call_operand.vmem [shape: f32[8,8], index: 8, kind: input, shape index: {}]   ;;  %s8190_s9 = inlined_call_operand.vmem [shape: f32[8,8], index: 9, kind: input, shape index: {}]   ;;  %s8191_s10 = inlined_call_operand.hbm [shape: f32[8,8], index: 10, kind: input, shape index: {}]   ;;  %s8192_s11 = inlined_call_operand.vmem [shape: f32[8,8], index: 11, kind: input, shape index: {}]   ;;  %s8193_s12 = inlined_call_operand.vmem [shape: f32[2,1,8], index: 12, kind: input, shape index: {}]   ;;  %s8194_s13 = inlined_call_operand.hbm [shape: f32[2,8,32], index: 13, kind: output, shape index: {}]  }
   0x1   :  { %8202 = sst [smem:[#allocation22_spill]] %s8183_s2 }
   0x2   :  { %8203 = sst [smem:[#allocation23_spill]] %s8185_s4 }
   0x3   :  { %8204 = sst [smem:[#allocation24_spill]] %s8186_s5 }
   0x4   :  { %8205 = sst [smem:[#allocation25_spill]] %s8187_s6 }
   0x5   :  { %8206 = sst [smem:[#allocation26_spill]] %s8188_s7 }
   0x6   :  { %8207 = sst [smem:[#allocation27_spill]] %s8189_s8 }
   0x7   :  { %8208 = sst [smem:[#allocation28_spill]] %s8190_s9 }
   0x8   :  { %8209 = sst [smem:[#allocation29_spill]] %s8191_s10 }
   0x9   :  { %8210 = sst [smem:[#allocation30_spill]] %s8192_s11 }
   0xa   :  { %8211 = sst [smem:[#allocation31_spill]] %s8193_s12 }
   0xb   :  { %8212 = sst [smem:[#allocation32_spill]] %s8194_s13 }
   0xc   :  { %18 = vsyncpa [#allocation3], 0 }
   0xd   :  { %20 = vsyncpa [#allocation3 + $0x1], 0 }
   0xe   :  { %21 = vsyncpa [#allocation6], 0 }
   0xf   :  { %23 = vsyncpa [#allocation6 + $0x1], 0 }
  0x10   :  { %24 = vsyncpa [#allocation9], 0 }
  0x11   :  { %25 = vsyncpa [#allocation12], 0 }
  0x12   :  { %26 = vsyncpa [#allocation4], 0 }
  0x13   :  { %28 = vsyncpa [#allocation4 + $0x1], 0  ;;  %s7398_s25 = smov 0   ;;  %s7400_s26 = smov 0  }
  0x14   :  { %s7402_s27 = smov 0   ;;  %s7404_s28 = smov 0  }
  0x15   :  { %s7406_s29 = smov 0   ;;  %s7408_s30 = smov 0  }
  0x16 LB: > { %8213 = sst [smem:[#allocation21_spill]] %s7294_s28  ;;  %s7429_s14 = sadd.s32 4294967295, %s7302_s30   ;;  %s7302_s30 = sphi %s7408_s30, %s34_s30   ;;  %s7298_s29 = sphi %s7406_s29, %s8251_s29   ;;  %s7294_s28 = sphi %s7404_s28, %s8250_s28   ;;  %s7290_s27 = sphi %s7402_s27, %s8249_s27   ;;  %s7286_s26 = sphi %s7400_s26, %s8248_s26   ;;  %s7282_s25 = sphi %s7398_s25, %s8247_s25  }
  0x17   : > { %p6083_p0 = scmp.ge.s32.totalorder %s7302_s30, 1  ;;  %p8198_p1 = scmp.eq.s32.totalorder %s7429_s14, 0 }
  0x18   : > { %p379_p2 = scmp.lt.s32.totalorder %s7302_s30, 3  ;;  %s7304_s16 = smov [#allocation7]  }
  0x19   : > { %s391_s17 = sshll.u32 %s7304_s16, 4  ;;  %s7305_s19 = smov [#allocation8]   ;;  %s7438_s17 = int_to_ptr.vmem [resolvable:$true] %s391_s17 }
  0x1a   : > { %p7434_p3 = pnand %p6083_p0, %p379_p2  ;;  %s407_s20 = sshll.u32 %s7305_s19, 4  ;;  %s7449_s20 = int_to_ptr.vmem [resolvable:$true] %s407_s20 }
  0x1b   : > { %s7306_s21 = smov [#allocation11]   ;;  %s8216_s2 = sld [smem:[#allocation22_spill]] }
  0x1c   : > { %s8214_s15 = scalar_select %p7434_p3, 1, 0 }
  0x1d   : > { %p6880_p4 = pneg %p7434_p3  ;;  %s7451_s22 = sshll.u32 %s7306_s21, 4  ;;  %s436_s22 = int_to_ptr.vmem [resolvable:$true] %s7451_s22 }
  0x1f   : > { %p7445_p6 = pnand %p6880_p4, %p8198_p1 }
  0x21   : > { %s7004_s16 = scalar_lea.hbm %s8216_s2, 512  ;;  %p7461_p8 = pneg %p7445_p6 }
  0x22   : > { %p7005_p7 = scmp.ne.s32.totalorder %s8216_s2, %s7004_s16  ;;  %p7011_p11 = scmp.lt.u32.totalorder %s7004_s16, %s8216_s2 }
  0x24   : > { %p7007_p9 = pnand %p7461_p8, %p7005_p7 }
  0x26   : > { %p7008_p10 = pneg %p7007_p9 }
  0x28   : > { %p7013_p12 = pnand %p7011_p11, %p7008_p10 }
  0x2a   : > { %7016 = shalt.err (!%p7013_p12)
}
  0x2b   : > { %s7017_s12 = scalar_lea.vmem %s7438_s17, 512  ;;  %p7025_p4 = scmp.lt.s32.totalorder %s7438_s17, %s7438_s17 }
  0x2c   : > { %p7018_p13 = scmp.ne.s32.totalorder %s7438_s17, %s7017_s12  ;;  %p7026_p5 = scmp.lt.s32.totalorder %s7017_s12, %s7017_s12 }
  0x2e   : > { %p7020_p0 = pnand %p7018_p13, %p7461_p8  ;;  %p7027_p7 = por %p7026_p5, %p7025_p4 }
  0x30   : > { %p7021_p2 = pneg %p7020_p0 }
  0x32   : > { %p7028_p9 = pnand %p7027_p7, %p7021_p2 }
  0x34   : > { %7031 = shalt.err (!%p7028_p9)
}
  0x35   : > { %s7307_s13 = smov 128   ;;  %s7308_s23 = smov 8  }
  0x36   : > { %6883 = dma.hbm_to_vmem [thread:$0]  (!%p7445_p6), %s8216_s2, 512, %s7438_s17, [#allocation6], %s7307_s13, %s7307_s13, %s7308_s23  }
  0x37   : > { %s8218_s4 = sld [smem:[#allocation23_spill]] }
  0x3d   : > { %s7032_s6 = scalar_lea.hbm %s8218_s4, 256 }
  0x3e   : > { %p7033_p5 = scmp.ne.s32.totalorder %s8218_s4, %s7032_s6  ;;  %p7039_p12 = scmp.lt.u32.totalorder %s7032_s6, %s8218_s4 }
  0x40   : > { %p7035_p10 = pnand %p7033_p5, %p7461_p8 }
  0x42   : > { %p7036_p11 = pneg %p7035_p10 }
  0x44   : > { %p7041_p13 = pnand %p7039_p12, %p7036_p11 }
  0x46   : > { %7044 = shalt.err (!%p7041_p13)
}
  0x47   : > { %s7045_s17 = scalar_lea.vmem %s7449_s20, 256  ;;  %p7053_p7 = scmp.lt.s32.totalorder %s7449_s20, %s7449_s20 }
  0x48   : > { %p7046_p0 = scmp.ne.s32.totalorder %s7449_s20, %s7045_s17  ;;  %p7054_p9 = scmp.lt.s32.totalorder %s7045_s17, %s7045_s17 }
  0x4a   : > { %p7048_p2 = pnand %p7046_p0, %p7461_p8  ;;  %p7055_p5 = por %p7054_p9, %p7053_p7 }
  0x4c   : > { %p7049_p4 = pneg %p7048_p2 }
  0x4e   : > { %p7056_p10 = pnand %p7055_p5, %p7049_p4 }
  0x50   : > { %7059 = shalt.err (!%p7056_p10)
}
  0x51   : > { %6886 = dma.hbm_to_vmem [thread:$0]  (!%p7445_p6), %s8218_s4, 256, %s7449_s20, [#allocation9], %s7307_s13, %s7307_s13, %s7308_s23  }
  0x52   : > { %s8219_s7 = sld [smem:[#allocation26_spill]] }
  0x58   : > { %s7060_s24 = scalar_lea.hbm %s8219_s7, 16 }
  0x59   : > { %p7061_p11 = scmp.ne.s32.totalorder %s8219_s7, %s7060_s24  ;;  %p7067_p0 = scmp.lt.u32.totalorder %s7060_s24, %s8219_s7 }
  0x5b   : > { %p7063_p12 = pnand %p7061_p11, %p7461_p8 }
  0x5d   : > { %p7064_p13 = pneg %p7063_p12 }
  0x5f   : > { %p7069_p2 = pnand %p7067_p0, %p7064_p13 }
  0x61   : > { %7072 = shalt.err (!%p7069_p2)
}
  0x62   : > { %s7073_s17 = scalar_lea.vmem %s436_s22, 16  ;;  %s7080_s20 = scalar_lea.vmem %s436_s22, 32 }
  0x63   : > { %p7074_p4 = scmp.ne.s32.totalorder %s436_s22, %s7073_s17  ;;  %p7081_p5 = scmp.lt.s32.totalorder %s436_s22, %s436_s22 }
  0x64   : > { %p7082_p10 = scmp.lt.s32.totalorder %s7080_s20, %s7073_s17 }
  0x65   : > { %p7076_p7 = pnand %p7074_p4, %p7461_p8 }
  0x66   : > { %p7083_p1 = por %p7082_p10, %p7081_p5 }
  0x67   : > { %p7077_p9 = pneg %p7076_p7 }
  0x69   : > { %p7084_p3 = pnand %p7083_p1, %p7077_p9 }
  0x6b   : > { %7087 = shalt.err (!%p7084_p3)
}
  0x6c   : > { %6892 = dma.hbm_to_vmem [thread:$0]  (!%p7445_p6), %s8219_s7, 16, %s436_s22, [#allocation12]  }
  0x6d   : > { %s7309_s6 = smov [#allocation10]   ;;  %s7310_s9 = smov [#allocation13]  }
  0x6e   : > { %s421_s8 = sshll.u32 %s7309_s6, 4  ;;  %s460_s11 = sshll.u32 %s7310_s9, 4  ;;  %s422_s8 = int_to_ptr.vmem [resolvable:$true] %s421_s8  ;;  %s461_s11 = int_to_ptr.vmem [resolvable:$true] %s460_s11 }
  0x6f   : > { %s8220_s5 = sld [smem:[#allocation24_spill]] }
  0x75   : > { %s7088_s19 = scalar_lea.hbm %s8220_s5, 16 }
  0x76   : > { %p7089_p1 = scmp.ne.s32.totalorder %s8220_s5, %s7088_s19  ;;  %p7095_p12 = scmp.lt.u32.totalorder %s7088_s19, %s8220_s5 }
  0x78   : > { %p7091_p3 = pnand %p7089_p1, %p7461_p8 }
  0x7a   : > { %p7092_p11 = pneg %p7091_p3 }
  0x7c   : > { %p7097_p13 = pnand %p7095_p12, %p7092_p11 }
  0x7e   : > { %7100 = shalt.err (!%p7097_p13)
}
  0x7f   : > { %s7101_s22 = scalar_lea.vmem %s422_s8, 16  ;;  %s7108_s13 = scalar_lea.vmem %s422_s8, 32 }
  0x80   : > { %p7102_p0 = scmp.ne.s32.totalorder %s422_s8, %s7101_s22  ;;  %p7109_p7 = scmp.lt.s32.totalorder %s422_s8, %s422_s8 }
  0x81   : > { %p7110_p9 = scmp.lt.s32.totalorder %s7108_s13, %s7101_s22 }
  0x82   : > { %p7104_p2 = pnand %p7102_p0, %p7461_p8 }
  0x83   : > { %p7111_p5 = por %p7110_p9, %p7109_p7 }
  0x84   : > { %p7105_p4 = pneg %p7104_p2 }
  0x86   : > { %p7112_p10 = pnand %p7111_p5, %p7105_p4 }
  0x88   : > { %7115 = shalt.err (!%p7112_p10)
}
  0x89   : > { %6889 = dma.hbm_to_vmem [thread:$0]  (!%p7445_p6), %s8220_s5, 16, %s422_s8, [#allocation9]  }
  0x8a   : > { %s8221_s10 = sld [smem:[#allocation29_spill]] }
  0x90   : > { %s7116_s16 = scalar_lea.hbm %s8221_s10, 128 }
  0x91   : > { %p7117_p1 = scmp.ne.s32.totalorder %s8221_s10, %s7116_s16  ;;  %p7123_p12 = scmp.lt.u32.totalorder %s7116_s16, %s8221_s10 }
  0x93   : > { %p7119_p3 = pnand %p7117_p1, %p7461_p8 }
  0x95   : > { %p7120_p11 = pneg %p7119_p3 }
  0x97   : > { %p7125_p13 = pnand %p7123_p12, %p7120_p11 }
  0x99   : > { %7128 = shalt.err (!%p7125_p13)
}
  0x9a   : > { %s7129_s20 = scalar_lea.vmem %s461_s11, 128  ;;  %p7137_p7 = scmp.lt.s32.totalorder %s461_s11, %s461_s11 }
  0x9b   : > { %p7130_p0 = scmp.ne.s32.totalorder %s461_s11, %s7129_s20  ;;  %p7138_p9 = scmp.lt.s32.totalorder %s7129_s20, %s7129_s20 }
  0x9d   : > { %p7132_p2 = pnand %p7130_p0, %p7461_p8  ;;  %p7139_p5 = por %p7138_p9, %p7137_p7 }
  0x9f   : > { %p7133_p4 = pneg %p7132_p2 }
  0xa1   : > { %p7140_p10 = pnand %p7139_p5, %p7133_p4 }
  0xa3   : > { %7143 = shalt.err (!%p7140_p10)
}
  0xa4   : > { %6895 = dma.hbm_to_vmem [thread:$0]  (!%p7445_p6), %s8221_s10, 128, %s461_s11, [#allocation12]  }
  0xa5   : > { %s6082_s28 = sadd.s32 4294967294, %s7302_s30   ;;  %s46_s13 = sadd.s32 1, %s7298_s29 }
  0xa6   : > { %s55_s18 = sadd.s32 1, %s7290_s27  ;;  %p48_p8 = scmp.ge.s32.totalorder %s46_s13, 2 }
  0xa7   : > { %p62_p1 = scmp.ne.s32.totalorder %s7290_s27, %s7286_s26  ;;  %p63_p3 = scmp.eq.s32.totalorder %s7302_s30, 0 }
  0xa8   : > { %p68_p11 = scmp.ne.s32.totalorder %s7286_s26, %s7282_s25  ;;  %s8253_s13 = smov (%p48_p8, %s46_s13), 0 }
  0xa9   : > { %p7570_p12 = por %p63_p3, %p62_p1  ;;  %p8223_p13 = scmp.eq.s32.totalorder %s7429_s14, 0 }
  0xaa   : > { %s50_s6 = ssub.s32 %s7298_s29, %s8253_s13  ;;  %p366_p0 = scmp.eq.s32.totalorder %s7429_s14, 1 }
  0xab   : > { %p7576_p6 = por %p8223_p13, %p68_p11  ;;  %p53_p2 = scmp.eq.s32.totalorder %s50_s6, 0 }
  0xac   : > { %p372_p4 = scmp.eq.s32.totalorder %s6082_s28, 1  ;;  %p7583_p7 = por %p366_p0, %p62_p1 }
  0xad   : > { %s8224_s11 = scalar_select %p7576_p6, 1, 0 }
  0xae   : > { %s8225_s9 = scalar_select %p7583_p7, 1, 0 }
  0xaf   : > { %p6912_p9 = scmp.lt.s32.totalorder %s7302_s30, 2  ;;  %p7591_p5 = por %p372_p4, %p68_p11 }
  0xb0   : > { %s7589_s24 = scalar_select %p53_p2, %s7290_s27, %s55_s18  }
  0xb1   : > { %s8226_s16 = scalar_select %p7591_p5, 1, 0 }
  0xb2   : > { %s474_s19 = sand.u32 1, %s7290_s27   ;;  %s6093_s12 = sshll.u32 %s7298_s29, 7 }
  0xb3   : > { %s7596_s21 = sshll.u32 %s474_s19, 3  ;;  %s7602_s8 = scalar_lea.hbm %s8181_s0, %s6093_s12 }
  0xb4   : > { %s478_s22 = scalar_lea.vmem [#allocation2], %s7596_s21  ;;  %p7609_p10 = pnand %p6912_p9, %p7570_p12 }
  0xb5   : > { %s486_s28 = sshll.u32 %s478_s22, 4  ;;  %s7616_s17 = scalar_lea.hbm %s8182_s1, %s6093_s12  ;;  %s7605_s28 = int_to_ptr.vmem [resolvable:$true] %s486_s28 }
  0xb6   : > { %s493_s20 = sand.u32 1, %s7302_s30   ;;  %s475_s4 = scalar_lea.sflag [#allocation3], %s474_s19 }
  0xb7   : > { %s7144_s5 = scalar_lea.hbm %s7602_s8, 128  ;;  %p7146_p1 = pneg %p7609_p10 }
  0xb8   : > { %p7145_p8 = scmp.ne.s32.totalorder %s7602_s8, %s7144_s5  ;;  %s7149_s7 = scalar_lea.hbm %s8181_s0, 256 }
  0xb9   : > { %p7150_p12 = scmp.lt.u32.totalorder %s7602_s8, %s8181_s0  ;;  %p7151_p13 = scmp.lt.u32.totalorder %s7149_s7, %s7144_s5 }
  0xba   : > { %p7147_p3 = pnand %p7146_p1, %p7145_p8  ;;  %p7153_p2 = scmp.lt.u32.totalorder %s7144_s5, %s7602_s8 }
  0xbb   : > { %p7152_p0 = por %p7151_p13, %p7150_p12 }
  0xbc   : > { %p7148_p11 = pneg %p7147_p3 }
  0xbd   : > { %p7154_p4 = por %p7153_p2, %p7152_p0 }
  0xbf   : > { %p7155_p9 = pnand %p7154_p4, %p7148_p11 }
  0xc1   : > { %7158 = shalt.err (!%p7155_p9)
}
  0xc2   : > { %s7159_s19 = scalar_lea.vmem %s7605_s28, 128  ;;  %s7311_s12 = smov [#allocation2]  }
  0xc3   : > { %p7160_p8 = scmp.ne.s32.totalorder %s7605_s28, %s7159_s19  ;;  %s7164_s6 = sshll.u32 %s7311_s12, 4  ;;  %s7165_s6 = int_to_ptr.vmem [resolvable:$false] %s7164_s6 }
  0xc4   : > { %s7166_s10 = scalar_lea.vmem %s7165_s6, 256  ;;  %p7167_p7 = scmp.lt.s32.totalorder %s7605_s28, %s7165_s6 }
  0xc5   : > { %p7162_p3 = pnand %p7160_p8, %p7146_p1  ;;  %p7168_p12 = scmp.lt.s32.totalorder %s7166_s10, %s7159_s19 }
  0xc7   : > { %p7163_p5 = pneg %p7162_p3  ;;  %p7169_p13 = por %p7168_p12, %p7167_p7 }
  0xc9   : > { %p7170_p0 = pnand %p7169_p13, %p7163_p5 }
  0xcb   : > { %7173 = shalt.err (!%p7170_p0)
}
  0xcc   : > { %6899 = dma.hbm_to_vmem [thread:$0]  (!%p7609_p10), %s7602_s8, 128, %s7605_s28, %s475_s4  }
  0xcd   : > { %s497_s5 = scalar_lea.vmem [#allocation5], %s7596_s21  ;;  %s494_s23 = scalar_lea.sflag [#allocation6], %s493_s20 }
  0xce   : > { %s504_s7 = sshll.u32 %s497_s5, 4  ;;  %s7174_s22 = scalar_lea.hbm %s7616_s17, 128  ;;  %s505_s7 = int_to_ptr.vmem [resolvable:$true] %s504_s7 }
  0xcf   : > { %p7175_p7 = scmp.ne.s32.totalorder %s7616_s17, %s7174_s22  ;;  %s7179_s12 = scalar_lea.hbm %s8182_s1, 256 }
  0xd0   : > { %p7180_p2 = scmp.lt.u32.totalorder %s7616_s17, %s8182_s1  ;;  %p7181_p4 = scmp.lt.u32.totalorder %s7179_s12, %s7174_s22 }
  0xd1   : > { %p7177_p5 = pnand %p7175_p7, %p7146_p1  ;;  %p7183_p8 = scmp.lt.u32.totalorder %s7174_s22, %s7616_s17 }
  0xd2   : > { %p7182_p9 = por %p7181_p4, %p7180_p2 }
  0xd3   : > { %p7178_p11 = pneg %p7177_p5 }
  0xd4   : > { %p7184_p3 = por %p7183_p8, %p7182_p9 }
  0xd6   : > { %p7185_p12 = pnand %p7184_p3, %p7178_p11 }
  0xd8   : > { %7188 = shalt.err (!%p7185_p12)
}
  0xd9   : > { %s7189_s4 = scalar_lea.vmem %s505_s7, 128  ;;  %s7312_s21 = smov [#allocation5]  }
  0xda   : > { %p7190_p13 = scmp.ne.s32.totalorder %s505_s7, %s7189_s4  ;;  %s7194_s8 = sshll.u32 %s7312_s21, 4  ;;  %s7195_s8 = int_to_ptr.vmem [resolvable:$false] %s7194_s8 }
  0xdb   : > { %s7196_s28 = scalar_lea.vmem %s7195_s8, 256  ;;  %p7197_p5 = scmp.lt.s32.totalorder %s505_s7, %s7195_s8 }
  0xdc   : > { %p7192_p0 = pnand %p7190_p13, %p7146_p1  ;;  %p7198_p6 = scmp.lt.s32.totalorder %s7196_s28, %s7189_s4 }
  0xde   : > { %p7193_p7 = pneg %p7192_p0  ;;  %p7199_p2 = por %p7198_p6, %p7197_p5 }
  0xe0   : > { %p7200_p4 = pnand %p7199_p2, %p7193_p7 }
  0xe2   : > { %7203 = shalt.err (!%p7200_p4)
}
  0xe3   : > { %6902 = dma.hbm_to_vmem [thread:$0]  (!%p7609_p10), %s7616_s17, 128, %s505_s7, %s494_s23  }
  0xe4   : > { %p8228_p11 = scmp.ne.s32.totalorder %s8214_s15, 0 }
  0xe5   : > { %s7669_s20 = sand.u32 (!%p8228_p11), 1, %s7286_s26   ;;  %p8229_p6 = scmp.ne.s32.totalorder (!%p8228_p11), %s8224_s11, 0 }
  0xe6   : > { %519 = sbr.rel (%p8228_p11) target bundleno = 1974 (0x7b6), region = 72  ;;  %s7672_s5 = sshll.u32 (!%p8228_p11), %s7669_s20, 3 }
  0xe7   : > { %s522_s22 = scalar_lea.sflag (!%p8228_p11), [#allocation3], %s7669_s20  ;;  %s525_s2 = scalar_lea.vmem (!%p8228_p11), [#allocation2], %s7672_s5 }
  0xed   : > { %7257 = dma.done.wait (%p8229_p6), %s522_s22, 128  }
  0xee   : > { %7259 = vsyncadd (%p8229_p6), %s522_s22, 4294967168  ;;  %s530_s15 = sand.u32 1, %s7429_s14   ;;  %s534_s17 = scalar_lea.vmem [#allocation5], %s7672_s5 }
  0xef   : > { %s531_s18 = scalar_lea.sflag [#allocation6], %s530_s15 }
  0xf0   : > { %7261 = dma.done.wait (%p8229_p6), %s531_s18, 128  }
  0xf1   : > { %7263 = vsyncadd (%p8229_p6), %s531_s18, 4294967168  ;;  %p8230_p10 = scmp.eq.s32.totalorder %s7429_s14, 0 }
  0xf3   : > { %7265 = dma.done.wait (%p8230_p10), [#allocation6], 512   ;;  %p8231_p1 = pmov %p8230_p10 }
  0xf5   : > { %7267 = vsyncadd (%p8231_p1), [#allocation6], 4294966784  ;;  %p8232_p9 = pmov %p8231_p1 }
  0xf6   : > { %p8233_p8 = pmov %p8231_p1 }
  0xf7   : > { %7269 = dma.done.wait (%p8232_p9), [#allocation9], 272  }
  0xf8   : > { %7271 = vsyncadd (%p8233_p8), [#allocation9], 4294967024  ;;  %p8234_p3 = pmov %p8231_p1 }
  0xf9   : > { %p8235_p12 = pmov %p8231_p1 }
  0xfa   : > { %7273 = dma.done.wait (%p8234_p3), [#allocation12], 144  }
  0xfb   : > { %7275 = vsyncadd (%p8235_p12), [#allocation12], 4294967152  ;;  %v7313_v0 = vmov 0.0|0.0   ;;  %vm7314_vm0 = vmmov 0   ;;  %v7315_v1 = vmov 0.0   ;;  %v626_v2 = vld [vmem:[#allocation7] sm:$0xff] }
  0xfc   : > { %6665 = vmatprep.subr.bf16.mxu0 %v7313_v0  ;;  %6701 = vmatprep.subr.bf16.mxu1 %v7313_v0  ;;  %v627_v3 = vld [vmem:[#allocation7 + $0x8] sm:$0xff]  ;;  %v628_v4 = vld [vmem:[#allocation7 + $0x10] sm:$0xff]  ;;  %vm637_vm1 = vcmask 261120   ;;  %v642_v5 = vand.u32 4294901760, %v626_v2  ;;  %v629_v7 = vld [vmem:[#allocation7 + $0x18] sm:$0xff]  ;;  %vm1135_vm2 = vcmask 130048  }
  0xfd   : > { %6283 = vmatprep.mubr.msk.f32.mxu0 %vm7314_vm0, %v7315_v1  ;;  %6345 = vmatprep.mubr.msk.f32.mxu1 %vm7314_vm0, %v7315_v1  ;;  %v645_v6 = vand.u32 4294901760, %v627_v3  ;;  %v648_v8 = vand.u32 4294901760, %v628_v4  ;;  %v1126_v9 = vld [vmem:[#allocation8] sm:$0xff]  ;;  %v1127_v10 = vld [vmem:[#allocation8 + $0x8] sm:$0xff]  ;;  %v651_v11 = vand.u32 4294901760, %v629_v7  ;;  %v625_v15 = vld [vmem:[%s534_s17] sm:$0xff] }
  0xfe   : > { %v1140_v12 = vand.u32 4294901760, %v1126_v9  ;;  %v1143_v13 = vand.u32 4294901760, %v1127_v10  ;;  %v624_v14 = vld [vmem:[%s525_s2] sm:$0xff]  ;;  %v7710_v17 = vsub.f32 %v626_v2, %v642_v5  ;;  %v1137_v26 = vsel %vm1135_vm2, %v625_v15, 0  ;;  %s7316_s7 = smov 124   ;;  %s7317_s23 = smov 116  }
  0xff   : > { %v7708_v16 = vpack.c.bf16 %v645_v6, %v642_v5  ;;  %v7712_v18 = vsub.f32 %v627_v3, %v645_v6  ;;  %v7714_v19 = vsub.f32 %v628_v4, %v648_v8  ;;  %v7716_v20 = vpack.c.bf16 %v651_v11, %v648_v8  ;;  %v6105_v2 = vld [vmem:[%s8184_s3] ss:$0 sm:$0xff]  ;;  %v6106_v3 = vld [vmem:[#allocation10] ss:$0 sm:$0xff]  ;;  %s7318_s19 = smov 108   ;;  %s8236_s10 = sld [smem:[#allocation27_spill]] }
 0x100   : > { %v7718_v21 = vsub.f32 %v629_v7, %v651_v11  ;;  %v7720_v22 = vpack.c.bf16 %v1143_v13, %v1140_v12  ;;  %v7722_v23 = vsub.f32 %v1126_v9, %v1140_v12  ;;  %v7725_v24 = vsub.f32 %v1127_v10, %v1143_v13  ;;  %s7319_s4 = smov 8   ;;  %v2068_v12 = vld [vmem:[#allocation13] sm:$0xff]  ;;  %s7320_s21 = smov 4  }
 0x101   : > { %6667 = vmatpush3.bf16.msra.mxu0 %v7708_v16  ;;  %v639_v25 = vsel %vm637_vm1, %v624_v14, 0  ;;  %v723_v27 = vand.u32 4294901760, %v7710_v17  ;;  %v7733_v29 = vand.u32 4294901760, %v1137_v26  ;;  %v730_v30 = vand.u32 4294901760, %v7712_v18  ;;  %s7321_s8 = smov 100   ;;  %s7322_s28 = smov 16  }
 0x102   : > { %6668 = vmatprep.subr.bf16.mxu0 %v7313_v0  ;;  %6703 = vmatpush3.bf16.msra.mxu1 %v7720_v22  ;;  %v7731_v28 = vand.u32 4294901760, %v639_v25  ;;  %v737_v31 = vand.u32 4294901760, %v7714_v19  ;;  %v744_v33 = vand.u32 4294901760, %v7718_v21  ;;  %v1219_v34 = vand.u32 4294901760, %v7722_v23  ;;  %s8237_s15 = sld [smem:[#allocation28_spill]]  ;;  %s8238_s14 = sld [smem:[#allocation30_spill]] }
 0x103   : > { %v724_v32 = vsub.f32 %v7710_v17, %v723_v27  ;;  %6704 = vmatprep.subr.bf16.mxu1 %v7313_v0  ;;  %v1226_v35 = vand.u32 4294901760, %v7725_v24  ;;  %v7746_v37 = vsub.f32 %v1137_v26, %v7733_v29  ;;  %v731_v38 = vsub.f32 %v7712_v18, %v730_v30  ;;  %s7323_s11 = smov 120   ;;  %s8240_s22 = sld [smem:[#allocation21_spill]] }
 0x104   : > { %v711_v36 = vsub.f32 %v639_v25, %v7731_v28  ;;  %v738_v39 = vsub.f32 %v7714_v19, %v737_v31  ;;  %v745_v41 = vsub.f32 %v7718_v21, %v744_v33  ;;  %v1220_v42 = vsub.f32 %v7722_v23, %v1219_v34  ;;  %s8241_s17 = sld [smem:[#allocation31_spill]]  ;;  %p8244_p7 = scmp.ne.s32.totalorder %s8225_s9, 0 }
 0x105   : > { %6670 = vmatpush3.bf16.msra.mxu0 %v7716_v20  ;;  %v725_v40 = vand.u32 4294901760, %v724_v32  ;;  %v1227_v43 = vsub.f32 %v7725_v24, %v1226_v35  ;;  %v7762_v45 = vand.u32 4294901760, %v7746_v37  ;;  %v732_v46 = vand.u32 4294901760, %v731_v38  ;;  %v2066_v11 = vld [vmem:[%s8236_s10] sm:$0xff]  ;;  %s8239_s10 = sld [smem:[#allocation25_spill]] }
 0x106   : > { %v712_v44 = vand.u32 4294901760, %v711_v36  ;;  %6671 = vmatprep.subr.bf16.mxu0 %v7313_v0  ;;  %v1221_v47 = vand.u32 4294901760, %v1220_v42  ;;  %v739_v52 = vand.u32 4294901760, %v738_v39  ;;  %v746_v53 = vand.u32 4294901760, %v745_v41 }
 0x107   : > { %v1228_v48 = vand.u32 4294901760, %v1227_v43  ;;  %v1209_v50 = vsub.f32 %v7746_v37, %v7762_v45  ;;  %v6672_v51 = vpack.c.bf16 %v732_v46, %v725_v40  ;;  %v6678_v58 = vpack.c.bf16 %v7712_v18, %v7710_v17 }
 0x108   : > { %v713_v49 = vsub.f32 %v711_v36, %v712_v44  ;;  %v6675_v57 = vpack.c.bf16 %v746_v53, %v739_v52  ;;  %v6708_v59 = vpack.c.bf16 %v7725_v24, %v7722_v23  ;;  %v6681_v60 = vpack.c.bf16 %v7718_v21, %v7714_v19  ;;  %v2067_v15 = vld [vmem:[%s8237_s15] sm:$0xff] }
 0x109   : > { %v6705_v54 = vpack.c.bf16 %v1228_v48, %v1221_v47  ;;  %v7766_v56 = vand.u32 4294901760, %v1209_v50  ;;  %v6690_v61 = vpack.c.bf16 %v730_v30, %v723_v27  ;;  %v6714_v62 = vpack.c.bf16 %v1226_v35, %v1219_v34  ;;  %p621_p13 = scmp.lt.s32.totalorder %s8240_s22, 1 }
 0x10a   : > { %v714_v55 = vand.u32 4294901760, %v713_v49  ;;  %v6693_v63 = vpack.c.bf16 %v744_v33, %v737_v31  ;;  %vm2086_vm3 = vcmask 31744   ;;  %vm2101_vm4 = vcmask 64512  }
 0x10b   : > { %6346 = vmatmul.mubr.f32.vlgmr.msra.gmra.mrb[0].mxu1 %v7766_v56  ;;  %s622_s2 = scalar_select %p621_p13, %s8240_s22, 1  ;;  %vm3969_vm5 = vcmask 130112   ;;  %vm4922_vm6 = vcmask 195712   ;;  %vm5875_vm7 = vcmask 261312  }
 0x10c   : > { %6284 = vmatmul.mubr.f32.vlgmr.msra.gmra.mrb[0].mxu0 %v714_v55  ;;  %6706 = vmatpush3.bf16.msra.mxu1 %v6705_v54 }
 0x10d   : > { %6673 = vmatpush3.bf16.msra.mxu0 %v6672_v51  ;;  %6294 = vmatprep.mubr.msk.f32.mxu0 %vm7314_vm0, %v7315_v1 }
 0x10e   : > { %6674 = vmatprep.subr.bf16.mxu0 %v7313_v0  ;;  %6352 = vmatprep.mubr.msk.f32.mxu1 %vm7314_vm0, %v7315_v1 }
 0x10f   : > { %6707 = vmatprep.subr.bf16.mxu1 %v7313_v0 }
 0x111   : > { %6676 = vmatpush3.bf16.msra.mxu0 %v6675_v57 }
 0x112   : > { %6677 = vmatprep.subr.bf16.mxu0 %v7313_v0 }
 0x113   : > { %6353 = vmatmul.mubr.f32.vlgmr.msra.gmra.mrb[0].mxu1 %v7733_v29 }
 0x114   : > { %6295 = vmatmul.mubr.f32.vlgmr.msra.gmra.mrb[0].mxu0 %v7731_v28  ;;  %6709 = vmatpush3.bf16.msra.mxu1 %v6708_v59 }
 0x115   : > { %6679 = vmatpush3.bf16.msra.mxu0 %v6678_v58  ;;  %6305 = vmatprep.mubr.msk.f32.mxu0 %vm7314_vm0, %v7315_v1 }
 0x116   : > { %6680 = vmatprep.subr.bf16.mxu0 %v7313_v0  ;;  %6359 = vmatprep.mubr.msk.f32.mxu1 %vm7314_vm0, %v7315_v1 }
 0x117   : > { %6710 = vmatprep.subr.bf16.mxu1 %v7313_v0 }
 0x119   : > { %6682 = vmatpush3.bf16.msra.mxu0 %v6681_v60 }
 0x11a   : > { %6683 = vmatprep.subr.bf16.mxu0 %v7313_v0 }
 0x11b   : > { %6360 = vmatmul.mubr.f32.vlgmr.msra.gmra.mrb[0].mxu1 %v7746_v37 }
 0x11c   : > { %6306 = vmatmul.mubr.f32.vlgmr.msra.gmra.mrb[0].mxu0 %v711_v36  ;;  %6712 = vmatpush3.bf16.msra.mxu1 %v7720_v22 }
 0x11d   : > { %6685 = vmatpush3.bf16.msra.mxu0 %v7708_v16  ;;  %6316 = vmatprep.mubr.msk.f32.mxu0 %vm7314_vm0, %v7315_v1 }
 0x11e   : > { %6686 = vmatprep.subr.bf16.mxu0 %v7313_v0  ;;  %6366 = vmatprep.mubr.msk.f32.mxu1 %vm7314_vm0, %v7315_v1 }
 0x11f   : > { %6713 = vmatprep.subr.bf16.mxu1 %v7313_v0 }
 0x121   : > { %6688 = vmatpush3.bf16.msra.mxu0 %v7716_v20 }
 0x122   : > { %6689 = vmatprep.subr.bf16.mxu0 %v7313_v0 }
 0x123   : > { %6367 = vmatmul.mubr.f32.vlgmr.msra.gmra.mrb[0].mxu1 %v7762_v45 }
 0x124   : > { %6317 = vmatmul.mubr.f32.vlgmr.msra.gmra.mrb[0].mxu0 %v712_v44  ;;  %6715 = vmatpush3.bf16.msra.mxu1 %v6714_v62 }
 0x125   : > { %6691 = vmatpush3.bf16.msra.mxu0 %v6690_v61  ;;  %6327 = vmatprep.mubr.msk.f32.mxu0 %vm7314_vm0, %v7315_v1 }
 0x126   : > { %6692 = vmatprep.subr.bf16.mxu0 %v7313_v0  ;;  %6373 = vmatprep.mubr.msk.f32.mxu1 %vm7314_vm0, %v7315_v1 }
 0x127   : > { %6716 = vmatprep.subr.bf16.mxu1 %v7313_v0 }
 0x129   : > { %6694 = vmatpush3.bf16.msra.mxu0 %v6693_v63 }
 0x12a   : > { %6695 = vmatprep.subr.bf16.mxu0 %v7313_v0 }
 0x12b   : > { %6374 = vmatmul.mubr.f32.vlgmr.msra.gmra.mrb[0].mxu1 %v7733_v29 }
 0x12c   : > { %6328 = vmatmul.mubr.f32.vlgmr.msra.gmra.mrb[0].mxu0 %v7731_v28  ;;  %6718 = vmatpush3.bf16.msra.mxu1 %v7720_v22 }
 0x12d   : > { %6697 = vmatpush3.bf16.msra.mxu0 %v7708_v16  ;;  %6338 = vmatprep.mubr.msk.f32.mxu0 %vm7314_vm0, %v7315_v1 }
 0x12e   : > { %6698 = vmatprep.subr.bf16.mxu0 %v7313_v0  ;;  %6380 = vmatprep.mubr.msk.f32.mxu1 %vm7314_vm0, %v7315_v1 }
 0x12f   : > { %6719 = vmatprep.subr.bf16.mxu1 %v7313_v0 }
 0x131   : > { %6700 = vmatpush3.bf16.msra.mxu0 %v7716_v20  ;;  %v2069_v20 = vld [vmem:[%s8238_s14] sm:$0xff]  ;;  %s623_s14 = scalar_lea.vmem %s8241_s17, %s622_s2 }
 0x132   : > { %6425 = vmatprep.subr.mxu0 %v7315_v1 }
 0x133   : > { %6381 = vmatmul.mubr.f32.vlgmr.msra.gmra.mrb[0].mxu1 %v7733_v29 }
 0x134   : > { %6339 = vmatmul.mubr.f32.vlgmr.msra.gmra.mrb[0].mxu0 %v7731_v28  ;;  %6387 = vmatprep.mubr.msk.f32.mxu1 %vm7314_vm0, %v7315_v1 }
 0x135   : > { %6427 = vmatprep.mubr.msk.f32.mxu0 %vm7314_vm0, %v7315_v1 }
 0x206   : > { %v1594_v5 = vpop.f32.mrb[0].mxu1 }
 0x207   : > { %v1122_v4 = vpop.f32.mrb[0].mxu0  ;;  %v7839_v7 = vadd.f32 %v6106_v3, %v1594_v5  ;;  %v6382_v9 = vpop.f32.mrb[1].mxu1 }
 0x208   : > { %v6737_v6 = vadd.f32 %v6105_v2, %v1122_v4  ;;  %v6340_v8 = vpop.f32.mrb[1].mxu0 }
 0x209   : > { %2092 = vrot.lane.b32.xlu1 %v7839_v7, %s7316_s7  ;;  %v2090_v54 = vmul.f32 %v7839_v7, %v2068_v12 }
 0x20a   : > { %v7841_v10 = vmul.f32 0.35355338, %v6737_v6 }
 0x20c   : > { %2080 = vrot.lane.b32.xlu0 %v7841_v10, %s7316_s7  ;;  %v2078_v39 = vmul.f32 %v7841_v10, %v2066_v11  ;;  %s7324_s7 = smov 24  }
 0x20d   : > { %3035 = vrot.lane.b32.xlu1 %v7839_v7, %s7317_s23 }
 0x210   : > { %3020 = vrot.lane.b32.xlu0 %v7841_v10, %s7317_s23  ;;  %s7325_s23 = smov 112  }
 0x211   : > { %3989 = vrot.lane.b32.xlu1 %v7839_v7, %s7318_s19 }
 0x214   : > { %3975 = vrot.lane.b32.xlu0 %v7841_v10, %s7318_s19  ;;  %s7326_s19 = smov 104  }
 0x218   : > { %3016 = vrot.lane.b32.xlu0 %v2066_v11, %s7319_s4 }
 0x21c   : > { %3031 = vrot.lane.b32.xlu0 %v2068_v12, %s7319_s4 }
 0x220   : > { %2083 = vrot.lane.b32.xlu0 %v7841_v10, %s7320_s21 }
 0x224   : > { %4928 = vrot.lane.b32.xlu0 %v7841_v10, %s7321_s8 }
 0x228   : > { %3971 = vrot.lane.b32.xlu0 %v2066_v11, %s7322_s28 }
 0x22c   : > { %3985 = vrot.lane.b32.xlu0 %v2068_v12, %s7322_s28 }
 0x27b   : > { %v2093_v13 = vpop.permute.xlu1 %2092 }
 0x27e   : > { %v2081_v14 = vpop.permute.xlu0 %2080 }
 0x27f   : > { %v3036_v16 = vpop.permute.xlu1 %3035 }
 0x280   : > { %v3038_v21 = vsel %vm2086_vm3, %v3036_v16, %v2093_v13 }
 0x281   : > { %v3039_v23 = vmul.f32 %v3038_v21, %v2069_v20 }
 0x282   : > { %v3021_v17 = vpop.permute.xlu0 %3020 }
 0x283   : > { %v3023_v18 = vsel %vm2086_vm3, %v3021_v17, %v2081_v14  ;;  %v3990_v27 = vpop.permute.xlu1 %3989 }
 0x284   : > { %v3024_v19 = vmul.f32 %v3023_v18, %v2067_v15  ;;  %v3992_v33 = vsel %vm2086_vm3, %v3990_v27, %v3036_v16 }
 0x285   : > { %v3993_v36 = vmul.f32 %v3992_v33, %v2069_v20 }
 0x286   : > { %3026 = vrot.lane.b32.xlu1 %v3024_v19, %s7319_s4  ;;  %v3976_v22 = vpop.permute.xlu0 %3975 }
 0x287   : > { %v3978_v26 = vsel %vm2086_vm3, %v3976_v22, %v3021_v17 }
 0x288   : > { %v3979_v31 = vmul.f32 %v3978_v26, %v2067_v15 }
 0x28a   : > { %3041 = vrot.lane.b32.xlu1 %v3039_v23, %s7319_s4  ;;  %v3017_v24 = vpop.permute.xlu0 %3016 }
 0x28b   : > { %v3019_v41 = vmul.f32 %v3017_v24, %v7841_v10 }
 0x28e   : > { %2095 = vrot.lane.b32.xlu1 %v7839_v7, %s7320_s21  ;;  %v3032_v25 = vpop.permute.xlu0 %3031 }
 0x28f   : > { %v3034_v47 = vmul.f32 %v7839_v7, %v3032_v25 }
 0x292   : > { %4942 = vrot.lane.b32.xlu1 %v7839_v7, %s7321_s8  ;;  %v2084_v28 = vpop.permute.xlu0 %2083  ;;  %s7327_s8 = smov [#allocation14]  }
 0x293   : > { %v2087_v30 = vsel %vm2086_vm3, %v2081_v14, %v2084_v28 }
 0x294   : > { %v2088_v32 = vmul.f32 %v2087_v30, %v2067_v15 }
 0x296   : > { %3981 = vrot.lane.b32.xlu1 %v3979_v31, %s7322_s28  ;;  %v4929_v34 = vpop.permute.xlu0 %4928  ;;  %v2089_v40 = vadd.f32 %v2088_v32, %v2078_v39 }
 0x297   : > { %v4931_v35 = vsel %vm2086_vm3, %v4929_v34, %v3976_v22 }
 0x298   : > { %v4932_v38 = vmul.f32 %v4931_v35, %v2067_v15  ;;  %v2103_v42 = vsel %vm2101_vm4, %v2089_v40, 0 }
 0x299   : > { %v2174_v46 = vand.u32 4294901760, %v2103_v42 }
 0x29a   : > { %3995 = vrot.lane.b32.xlu1 %v3993_v36, %s7322_s28  ;;  %v3972_v53 = vpop.permute.xlu0 %3971 }
 0x29b   : > { %v2175_v50 = vsub.f32 %v2103_v42, %v2174_v46  ;;  %v3974_v2 = vmul.f32 %v3972_v53, %v7841_v10 }
 0x29d   : > { %v2176_v57 = vand.u32 4294901760, %v2175_v50 }
 0x29e   : > { %v3986_v4 = vpop.permute.xlu0 %3985 }
 0x29f   : > { %v2177_v63 = vsub.f32 %v2175_v50, %v2176_v57 }
 0x2a1   : > { %v2178_v9 = vand.u32 4294901760, %v2177_v63 }
 0x2f8   : > { %v3027_v43 = vpop.permute.xlu1 %3026 }
 0x2f9   : > { %v3029_v44 = vadd.f32 %v3027_v43, %v3019_v41 }
 0x2fb   : > { %3046 = vrot.lane.b32.xlu0 %v3029_v44, %s7323_s11 }
 0x2fc   : > { %v3042_v48 = vpop.permute.xlu1 %3041 }
 0x2fd   : > { %v3044_v49 = vadd.f32 %v3042_v48, %v3034_v47 }
 0x2ff   : > { %4924 = vrot.lane.b32.xlu0 %v2066_v11, %s7324_s7  ;;  %3049 = vrot.lane.b32.xlu1 %v3044_v49, %s7323_s11  ;;  %v3988_v11 = vmul.f32 %v7839_v7, %v3986_v4 }
 0x300   : > { %v2096_v51 = vpop.permute.xlu1 %2095 }
 0x301   : > { %v2098_v52 = vsel %vm2086_vm3, %v2093_v13, %v2096_v51  ;;  %v1599_v51 = vld [vmem:[%s8239_s10 + $0x8] sm:$0xff] }
 0x302   : > { %v2099_v55 = vmul.f32 %v2098_v52, %v2069_v20 }
 0x303   : > { %4938 = vrot.lane.b32.xlu0 %v2068_v12, %s7324_s7  ;;  %4934 = vrot.lane.b32.xlu1 %v4932_v38, %s7324_s7 }
 0x304   : > { %v2100_v58 = vadd.f32 %v2099_v55, %v2090_v54  ;;  %v4943_v59 = vpop.permute.xlu1 %4942  ;;  %v1611_v54 = vand.u32 4294901760, %v1599_v51 }
 0x305   : > { %v4945_v60 = vsel %vm2086_vm3, %v4943_v59, %v3990_v27 }
 0x306   : > { %v2106_v61 = vsel %vm2101_vm4, %v2100_v58, 0  ;;  %v4946_v62 = vmul.f32 %v4945_v60, %v2069_v20  ;;  %v1693_v59 = vsub.f32 %v1599_v51, %v1611_v54 }
 0x307   : > { %v2109_v3 = vand.u32 4294901760, %v2106_v61 }
 0x308   : > { %v3982_v5 = vpop.permute.xlu1 %3981  ;;  %4948 = vrot.lane.b32.xlu1 %v4946_v62, %s7324_s7  ;;  %v1694_v62 = vand.u32 4294901760, %v1693_v59 }
 0x309   : > { %v3984_v6 = vadd.f32 %v3982_v5, %v3974_v2  ;;  %6426 = vmatpush3.xpose.msra.mxu0 %v2109_v3  ;;  %v2186_v8 = vsub.f32 %v2106_v61, %v2109_v3 }
 0x30a   : > { %6430 = vmatprep.subr.mxu0 %v7315_v1 }
 0x30b   : > { %4000 = vrot.lane.b32.xlu0 %v3984_v6, %s7325_s23  ;;  %v2187_v12 = vand.u32 4294901760, %v2186_v8 }
 0x30c   : > { %v3996_v13 = vpop.permute.xlu1 %3995  ;;  %6428 = vmatmul.mubr.f32.vlgmr.msra.gmra.mrb[2].mxu0 %v2178_v9 }
 0x30d   : > { %v3998_v14 = vadd.f32 %v3996_v13, %v3988_v11  ;;  %v2188_v15 = vsub.f32 %v2186_v8, %v2187_v12  ;;  %6432 = vmatprep.mubr.msk.f32.mxu0 %vm7314_vm0, %v7315_v1 }
 0x30f   : > { %4003 = vrot.lane.b32.xlu1 %v3998_v14, %s7325_s23  ;;  %v2189_v16 = vand.u32 4294901760, %v2188_v15 }
 0x311   : > { %6431 = vmatpush3.xpose.msra.mxu0 %v2189_v16 }
 0x312   : > { %6435 = vmatprep.subr.mxu0 %v7315_v1 }
 0x314   : > { %6433 = vmatmul.mubr.f32.vlgmr.msra.gmra.mrb[2].mxu0 %v2174_v46 }
 0x315   : > { %6436 = vmatpush3.xpose.msra.mxu0 %v2186_v8  ;;  %6437 = vmatprep.mubr.msk.f32.mxu0 %vm7314_vm0, %v7315_v1 }
 0x316   : > { %6440 = vmatprep.subr.mxu0 %v7315_v1 }
 0x31c   : > { %6438 = vmatmul.mubr.f32.vlgmr.msra.gmra.mrb[2].mxu0 %v2175_v50  ;;  %v1598_v50 = vld [vmem:[%s8239_s10] sm:$0xff] }
 0x31d   : > { %6441 = vmatpush3.xpose.msra.mxu0 %v2109_v3  ;;  %6442 = vmatprep.mubr.msk.f32.mxu0 %vm7314_vm0, %v7315_v1  ;;  %v1608_v53 = vand.u32 4294901760, %v1598_v50 }
 0x31e   : > { %6445 = vmatprep.subr.mxu0 %v7315_v1 }
 0x31f   : > { %v1686_v58 = vsub.f32 %v1598_v50, %v1608_v53 }
 0x321   : > { %v1687_v61 = vand.u32 4294901760, %v1686_v58  ;;  %v6726_v8 = vpack.c.bf16 %v1693_v59, %v1686_v58 }
 0x323   : > { %v1688_v2 = vsub.f32 %v1686_v58, %v1687_v61 }
 0x324   : > { %6443 = vmatmul.mubr.f32.vlgmr.msra.gmra.mrb[2].mxu0 %v2176_v57  ;;  %v6720_v57 = vpack.c.bf16 %v1611_v54, %v1608_v53 }
 0x325   : > { %6446 = vmatpush3.xpose.msra.mxu0 %v2187_v12  ;;  %6447 = vmatprep.mubr.msk.f32.mxu0 %vm7314_vm0, %v7315_v1  ;;  %v1689_v4 = vand.u32 4294901760, %v1688_v2 }
 0x326   : > { %6450 = vmatprep.subr.mxu0 %v7315_v1  ;;  %6721 = vmatpush3.bf16.msra.mxu1 %v6720_v57 }
 0x327   : > { %6722 = vmatprep.subr.bf16.mxu1 %v7313_v0 }
 0x329   : > { %6388 = vmatmul.mubr.f32.vlgmr.msra.gmra.mrb[2].mxu1 %v7766_v56  ;;  %v6732_v56 = vpack.c.bf16 %v1694_v62, %v1687_v61 }
 0x32a   : > { %6394 = vmatprep.mubr.msk.f32.mxu1 %vm7314_vm0, %v7315_v1 }
 0x32c   : > { %6448 = vmatmul.mubr.f32.vlgmr.msra.gmra.mrb[2].mxu0 %v2174_v46 }
 0x32d   : > { %6451 = vmatpush3.xpose.msra.mxu0 %v2109_v3  ;;  %6452 = vmatprep.mubr.msk.f32.mxu0 %vm7314_vm0, %v7315_v1  ;;  %v1695_v3 = vsub.f32 %v1693_v59, %v1694_v62 }
 0x32e   : > { %6485 = vmatprep.subr.mxu0 %v7315_v1 }
 0x32f   : > { %v1696_v5 = vand.u32 4294901760, %v1695_v3 }
 0x331   : > { %v6723_v6 = vpack.c.bf16 %v1696_v5, %v1689_v4 }
 0x333   : > { %6724 = vmatpush3.bf16.msra.mxu1 %v6723_v6 }
 0x334   : > { %6453 = vmatmul.mubr.f32.vlgmr.msra.gmra.mrb[2].mxu0 %v2174_v46  ;;  %6725 = vmatprep.subr.bf16.mxu1 %v7313_v0 }
 0x335   : > { %6487 = vmatprep.mubr.msk.f32.mxu0 %vm7314_vm0, %v7315_v1 }
 0x336   : > { %6395 = vmatmul.mubr.f32.vlgmr.msra.gmra.mrb[2].mxu1 %v7733_v29 }
 0x337   : > { %6727 = vmatpush3.bf16.msra.mxu1 %v6726_v8  ;;  %6401 = vmatprep.mubr.msk.f32.mxu1 %vm7314_vm0, %v7315_v1 }
 0x338   : > { %6728 = vmatprep.subr.bf16.mxu1 %v7313_v0 }
 0x33e   : > { %6402 = vmatmul.mubr.f32.vlgmr.msra.gmra.mrb[2].mxu1 %v7746_v37 }
 0x33f   : > { %6730 = vmatpush3.bf16.msra.mxu1 %v6720_v57  ;;  %6408 = vmatprep.mubr.msk.f32.mxu1 %vm7314_vm0, %v7315_v1 }
 0x340   : > { %6731 = vmatprep.subr.bf16.mxu1 %v7313_v0 }
 0x346   : > { %6409 = vmatmul.mubr.f32.vlgmr.msra.gmra.mrb[2].mxu1 %v7762_v45 }
 0x347   : > { %6733 = vmatpush3.bf16.msra.mxu1 %v6732_v56  ;;  %6415 = vmatprep.mubr.msk.f32.mxu1 %vm7314_vm0, %v7315_v1 }
 0x348   : > { %6734 = vmatprep.subr.bf16.mxu1 %v7313_v0 }
 0x34e   : > { %6416 = vmatmul.mubr.f32.vlgmr.msra.gmra.mrb[2].mxu1 %v7733_v29 }
 0x34f   : > { %6736 = vmatpush3.bf16.msra.mxu1 %v6720_v57  ;;  %6422 = vmatprep.mubr.msk.f32.mxu1 %vm7314_vm0, %v7315_v1 }
 0x350   : > { %6455 = vmatprep.subr.mxu1 %v7315_v1 }
 0x356   : > { %6423 = vmatmul.mubr.f32.vlgmr.msra.gmra.mrb[2].mxu1 %v7733_v29 }
 0x357   : > { %6457 = vmatprep.mubr.msk.f32.mxu1 %vm7314_vm0, %v7315_v1 }
 0x36d   : > { %v3047_v17 = vpop.permute.xlu0 %3046 }
 0x36e   : > { %v3051_v18 = vsel %vm2101_vm4, %v3047_v17, 0 }
 0x36f   : > { %v3121_v19 = vand.u32 4294901760, %v3051_v18 }
 0x371   : > { %v3122_v20 = vsub.f32 %v3051_v18, %v3121_v19  ;;  %v3050_v21 = vpop.permute.xlu1 %3049  ;;  %v4925_v22 = vpop.permute.xlu0 %4924 }
 0x372   : > { %v3053_v23 = vsel %vm2101_vm4, %v3050_v21, 0  ;;  %v4927_v26 = vmul.f32 %v4925_v22, %v7841_v10 }
 0x373   : > { %v3123_v24 = vand.u32 4294901760, %v3122_v20  ;;  %v3056_v25 = vand.u32 4294901760, %v3053_v23 }
 0x375   : > { %v3124_v27 = vsub.f32 %v3122_v20, %v3123_v24  ;;  %v3133_v28 = vsub.f32 %v3053_v23, %v3056_v25  ;;  %v4935_v30 = vpop.permute.xlu1 %4934  ;;  %6486 = vmatpush3.xpose.msra.mxu0 %v3056_v25  ;;  %v4939_v32 = vpop.permute.xlu0 %4938 }
 0x376   : > { %v4937_v31 = vadd.f32 %v4935_v30, %v4927_v26  ;;  %6490 = vmatprep.subr.mxu0 %v7315_v1  ;;  %v4941_v36 = vmul.f32 %v7839_v7, %v4939_v32 }
 0x377   : > { %v3125_v33 = vand.u32 4294901760, %v3124_v27  ;;  %v3134_v34 = vand.u32 4294901760, %v3133_v28 }
 0x378   : > { %4953 = vrot.lane.b32.xlu0 %v4937_v31, %s7326_s19 }
 0x379   : > { %v3135_v35 = vsub.f32 %v3133_v28, %v3134_v34  ;;  %6488 = vmatmul.mubr.f32.vlgmr.msra.gmra.mrb[4].mxu0 %v3125_v33 }
 0x37a   : > { %v4949_v38 = vpop.permute.xlu1 %4948  ;;  %6492 = vmatprep.mubr.msk.f32.mxu0 %vm7314_vm0, %v7315_v1 }
 0x37b   : > { %v3136_v10 = vand.u32 4294901760, %v3135_v35  ;;  %v4951_v39 = vadd.f32 %v4949_v38, %v4941_v36 }
 0x37d   : > { %4956 = vrot.lane.b32.xlu1 %v4951_v39, %s7326_s19  ;;  %6491 = vmatpush3.xpose.msra.mxu0 %v3136_v10  ;;  %v4001_v7 = vpop.permute.xlu0 %4000  ;;  %v6107_v39 = vld [vmem:[#allocation11] ss:$0 sm:$0xff] }
 0x37e   : > { %6495 = vmatprep.subr.mxu0 %v7315_v1  ;;  %v4005_v41 = vsel %vm2101_vm4, %v4001_v7, 0 }
 0x37f   : > { %v7932_v43 = vand.u32 4294901760, %v4005_v41 }
 0x381   : > { %6493 = vmatmul.mubr.f32.vlgmr.msra.gmra.mrb[4].mxu0 %v3121_v19  ;;  %v4004_v40 = vpop.permute.xlu1 %4003  ;;  %v4076_v46 = vsub.f32 %v4005_v41, %v7932_v43 }
 0x382   : > { %6496 = vmatpush3.xpose.msra.mxu0 %v3133_v28  ;;  %6497 = vmatprep.mubr.msk.f32.mxu0 %vm7314_vm0, %v7315_v1  ;;  %v4007_v42 = vsel %vm2101_vm4, %v4004_v40, 0 }
 0x383   : > { %6500 = vmatprep.subr.mxu0 %v7315_v1  ;;  %v7935_v44 = vand.u32 4294901760, %v4007_v42  ;;  %v4077_v48 = vand.u32 4294901760, %v4076_v46 }
 0x385   : > { %v4087_v47 = vsub.f32 %v4007_v42, %v7935_v44  ;;  %v4078_v52 = vsub.f32 %v4076_v46, %v4077_v48 }
 0x387   : > { %v4088_v49 = vand.u32 4294901760, %v4087_v47  ;;  %v4079_v60 = vand.u32 4294901760, %v4078_v52 }
 0x389   : > { %6498 = vmatmul.mubr.f32.vlgmr.msra.gmra.mrb[4].mxu0 %v3122_v20  ;;  %v4089_v55 = vsub.f32 %v4087_v47, %v4088_v49  ;;  %v6108_v20 = vld [vmem:[%s623_s14] ss:$0 sm:$0xff] }
 0x38a   : > { %6501 = vmatpush3.xpose.msra.mxu0 %v3056_v25  ;;  %6502 = vmatprep.mubr.msk.f32.mxu0 %vm7314_vm0, %v7315_v1 }
 0x38b   : > { %6505 = vmatprep.subr.mxu0 %v7315_v1  ;;  %v4090_v63 = vand.u32 4294901760, %v4089_v55 }
 0x391   : > { %6503 = vmatmul.mubr.f32.vlgmr.msra.gmra.mrb[4].mxu0 %v3123_v24 }
 0x392   : > { %6506 = vmatpush3.xpose.msra.mxu0 %v3134_v34  ;;  %6507 = vmatprep.mubr.msk.f32.mxu0 %vm7314_vm0, %v7315_v1 }
 0x393   : > { %6510 = vmatprep.subr.mxu0 %v7315_v1 }
 0x399   : > { %6508 = vmatmul.mubr.f32.vlgmr.msra.gmra.mrb[4].mxu0 %v3121_v19 }
 0x39a   : > { %6511 = vmatpush3.xpose.msra.mxu0 %v3056_v25  ;;  %6512 = vmatprep.mubr.msk.f32.mxu0 %vm7314_vm0, %v7315_v1 }
 0x39b   : > { %6545 = vmatprep.subr.mxu0 %v7315_v1 }
 0x3a1   : > { %6513 = vmatmul.mubr.f32.vlgmr.msra.gmra.mrb[4].mxu0 %v3121_v19 }
 0x3a2   : > { %6546 = vmatpush3.xpose.msra.mxu0 %v7935_v44  ;;  %6547 = vmatprep.mubr.msk.f32.mxu0 %vm7314_vm0, %v7315_v1 }
 0x3a3   : > { %6550 = vmatprep.subr.mxu0 %v7315_v1 }
 0x3a5   : > { %6548 = vmatmul.mubr.f32.vlgmr.msra.gmra.mrb[6].mxu0 %v4079_v60 }
 0x3a6   : > { %6551 = vmatpush3.xpose.msra.mxu0 %v4090_v63  ;;  %6552 = vmatprep.mubr.msk.f32.mxu0 %vm7314_vm0, %v7315_v1 }
 0x3a7   : > { %6555 = vmatprep.subr.mxu0 %v7315_v1 }
 0x3ad   : > { %6553 = vmatmul.mubr.f32.vlgmr.msra.gmra.mrb[6].mxu0 %v7932_v43 }
 0x3ae   : > { %6556 = vmatpush3.xpose.msra.mxu0 %v4087_v47  ;;  %6557 = vmatprep.mubr.msk.f32.mxu0 %vm7314_vm0, %v7315_v1 }
 0x3af   : > { %6560 = vmatprep.subr.mxu0 %v7315_v1 }
 0x3b5   : > { %6558 = vmatmul.mubr.f32.vlgmr.msra.gmra.mrb[6].mxu0 %v4076_v46 }
 0x3b6   : > { %6561 = vmatpush3.xpose.msra.mxu0 %v7935_v44  ;;  %6562 = vmatprep.mubr.msk.f32.mxu0 %vm7314_vm0, %v7315_v1 }
 0x3b7   : > { %6565 = vmatprep.subr.mxu0 %v7315_v1 }
 0x3bd   : > { %6563 = vmatmul.mubr.f32.vlgmr.msra.gmra.mrb[6].mxu0 %v4077_v48 }
 0x3be   : > { %6566 = vmatpush3.xpose.msra.mxu0 %v4088_v49  ;;  %6567 = vmatprep.mubr.msk.f32.mxu0 %vm7314_vm0, %v7315_v1 }
 0x3bf   : > { %6570 = vmatprep.subr.mxu0 %v7315_v1 }
 0x3c5   : > { %6568 = vmatmul.mubr.f32.vlgmr.msra.gmra.mrb[6].mxu0 %v7932_v43 }
 0x3c6   : > { %6571 = vmatpush3.xpose.msra.mxu0 %v7935_v44  ;;  %6572 = vmatprep.mubr.msk.f32.mxu0 %vm7314_vm0, %v7315_v1 }
 0x3c7   : > { %6605 = vmatprep.subr.mxu0 %v7315_v1 }
 0x3cd   : > { %6573 = vmatmul.mubr.f32.vlgmr.msra.gmra.mrb[6].mxu0 %v7932_v43 }
 0x3ce   : > { %6607 = vmatprep.mubr.msk.f32.mxu0 %vm7314_vm0, %v7315_v1 }
 0x3ea   : > { %v4954_v0 = vpop.permute.xlu0 %4953 }
 0x3eb   : > { %v4958_v37 = vsel %vm2101_vm4, %v4954_v0, 0 }
 0x3ec   : > { %v5028_v45 = vand.u32 4294901760, %v4958_v37 }
 0x3ee   : > { %v5029_v9 = vsub.f32 %v4958_v37, %v5028_v45 }
 0x3ef   : > { %v4957_v11 = vpop.permute.xlu1 %4956 }
 0x3f0   : > { %v5030_v12 = vand.u32 4294901760, %v5029_v9  ;;  %v4960_v13 = vsel %vm2101_vm4, %v4957_v11, 0 }
 0x3f1   : > { %v4963_v14 = vand.u32 4294901760, %v4960_v13 }
 0x3f2   : > { %v5031_v15 = vsub.f32 %v5029_v9, %v5030_v12 }
 0x3f3   : > { %v5040_v16 = vsub.f32 %v4960_v13, %v4963_v14  ;;  %6606 = vmatpush3.xpose.msra.mxu0 %v4963_v14 }
 0x3f4   : > { %v5032_v17 = vand.u32 4294901760, %v5031_v15  ;;  %6610 = vmatprep.subr.mxu0 %v7315_v1 }
 0x3f5   : > { %v5041_v29 = vand.u32 4294901760, %v5040_v16 }
 0x3f6   : > { %6608 = vmatmul.mubr.f32.vlgmr.msra.gmra.mrb[8].mxu0 %v5032_v17 }
 0x3f7   : > { %v5042_v18 = vsub.f32 %v5040_v16, %v5041_v29  ;;  %6612 = vmatprep.mubr.msk.f32.mxu0 %vm7314_vm0, %v7315_v1 }
 0x3f9   : > { %v5043_v19 = vand.u32 4294901760, %v5042_v18 }
 0x3fb   : > { %6611 = vmatpush3.xpose.msra.mxu0 %v5043_v19 }
 0x3fc   : > { %6615 = vmatprep.subr.mxu0 %v7315_v1 }
 0x3fe   : > { %6613 = vmatmul.mubr.f32.vlgmr.msra.gmra.mrb[8].mxu0 %v5028_v45 }
 0x3ff   : > { %6616 = vmatpush3.xpose.msra.mxu0 %v5040_v16  ;;  %6617 = vmatprep.mubr.msk.f32.mxu0 %vm7314_vm0, %v7315_v1 }
 0x400   : > { %6620 = vmatprep.subr.mxu0 %v7315_v1 }
 0x406   : > { %6618 = vmatmul.mubr.f32.vlgmr.msra.gmra.mrb[8].mxu0 %v5029_v9 }
 0x407   : > { %6621 = vmatpush3.xpose.msra.mxu0 %v4963_v14  ;;  %v2550_v21 = vpop.f32.mrb[2].mxu0  ;;  %6622 = vmatprep.mubr.msk.f32.mxu0 %vm7314_vm0, %v7315_v1 }
 0x408   : > { %v6740_v22 = vadd.f32 %v6108_v20, %v2550_v21  ;;  %v6454_v23 = vpop.f32.mrb[3].mxu0  ;;  %6625 = vmatprep.subr.mxu0 %v7315_v1 }
 0x40a   : > { %v2554_v24 = vsel %vm2101_vm4, %v6740_v22, -inf }
 0x40b   : > { %2555 = vmax.xlane.f32.xlu0 %v2554_v24 }
 0x40e   : > { %6623 = vmatmul.mubr.f32.vlgmr.msra.gmra.mrb[8].mxu0 %v5030_v12 }
 0x40f   : > { %6626 = vmatpush3.xpose.msra.mxu0 %v5041_v29  ;;  %6627 = vmatprep.mubr.msk.f32.mxu0 %vm7314_vm0, %v7315_v1 }
 0x410   : > { %6630 = vmatprep.subr.mxu0 %v7315_v1 }
 0x416   : > { %6628 = vmatmul.mubr.f32.vlgmr.msra.gmra.mrb[8].mxu0 %v5028_v45 }
 0x417   : > { %6631 = vmatpush3.xpose.msra.mxu0 %v4963_v14  ;;  %6632 = vmatprep.mubr.msk.f32.mxu0 %vm7314_vm0, %v7315_v1 }
 0x41e   : > { %6633 = vmatmul.mubr.f32.vlgmr.msra.gmra.mrb[8].mxu0 %v5028_v45 }
 0x429   : > { %v2062_v7 = vpop.f32.mrb[2].mxu1 }
 0x42a   : > { %v6739_v40 = vadd.f32 %v6107_v39, %v2062_v7  ;;  %v6424_v41 = vpop.f32.mrb[3].mxu1 }
 0x42c   : > { %v2569_v42 = vand.u32 4294901760, %v6739_v40 }
 0x42e   : > { %6456 = vmatpush3.msra.mxu1 %v2569_v42  ;;  %v2646_v60 = vsub.f32 %v6739_v40, %v2569_v42 }
 0x42f   : > { %6460 = vmatprep.subr.mxu1 %v7315_v1 }
 0x430   : > { %v2647_v63 = vand.u32 4294901760, %v2646_v60 }
 0x432   : > { %v2648_v6 = vsub.f32 %v2646_v60, %v2647_v63 }
 0x434   : > { %v2649_v0 = vand.u32 4294901760, %v2648_v6 }
 0x474   : > { %v3497_v25 = vpop.f32.mrb[4].mxu0 }
 0x475   : > { %v6741_v26 = vadd.f32 %v6108_v20, %v3497_v25  ;;  %v6514_v27 = vpop.f32.mrb[5].mxu0 }
 0x477   : > { %v3501_v28 = vsel %vm2101_vm4, %v6741_v26, -inf }
 0x478   : > { %3502 = vmax.xlane.f32.xlu1 %v3501_v28 }
 0x498   : > { %v2556_v30 = vpop.xlane.xlu0 %2555 }
 0x499   : > { %v2557_v31 = vsub.f32 %v6740_v22, %v2556_v30 }
 0x49b   : > { %v2558_v32 = vmul.f32 1.442695, %v2557_v31 }
 0x49d   : > { %6988 = vpow2.f32 %v2558_v32 }
 0x4a0   : > { %v4451_v33 = vpop.f32.mrb[6].mxu0 }
 0x4a1   : > { %v6574_v34 = vpop.f32.mrb[7].mxu0  ;;  %v6742_v36 = vadd.f32 %v6108_v20, %v4451_v33 }
 0x4a3   : > { %v4455_v10 = vsel %vm2101_vm4, %v6742_v36, -inf }
 0x4a7   : > { %v6989_v35 = vpop.eup %6988 }
 0x4a8   : > { %v2560_v38 = vsel %vm2101_vm4, %v6989_v35, 0.0 }
 0x4a9   : > { %2561 = vadd.xlane.f32.xlu0 %v2560_v38 }
 0x4ad   : > { %4456 = vmax.xlane.f32.xlu0 %v4455_v10 }
 0x4f1   : > { %v5404_v43 = vpop.f32.mrb[8].mxu0 }
 0x4f2   : > { %v6743_v44 = vadd.f32 %v6108_v20, %v5404_v43  ;;  %v6634_v46 = vpop.f32.mrb[9].mxu0 }
 0x4f4   : > { %v5408_v47 = vsel %vm2101_vm4, %v6743_v44, -inf }
 0x4f5   : > { %5409 = vmax.xlane.f32.xlu0 %v5408_v47 }
 0x505   : > { %v3503_v48 = vpop.xlane.xlu1 %3502 }
 0x506   : > { %v3504_v49 = vsub.f32 %v6741_v26, %v3503_v48 }
 0x508   : > { %v3505_v50 = vmul.f32 1.442695, %v3504_v49 }
 0x50a   : > { %6990 = vpow2.f32 %v3505_v50 }
 0x514   : > { %v8026_v51 = vpop.eup %6990 }
 0x515   : > { %v3507_v52 = vsel %vm2101_vm4, %v8026_v51, 0.0 }
 0x516   : > { %3508 = vadd.xlane.f32.xlu1 %v3507_v52 }
 0x527   : > { %3513 = vrot.lane.b32.xlu1 %v6739_v40, %s7323_s11  ;;  %s8111_s11 = scalar_lea.vmem [#allocation14], %s7672_s5  ;;  %s6110_s5 = sshll.u32 %s8240_s22, 7 }
 0x528   : > { %s7208_s22 = sshll.u32 %s7327_s8, 4  ;;  %s7209_s22 = int_to_ptr.vmem [resolvable:$false] %s7208_s22 }
 0x529   : > { %s7210_s2 = scalar_lea.vmem %s7209_s22, 256 }
 0x536   : > { %v2562_v53 = vpop.xlane.xlu0 %2561 }
 0x537   : > { %6992 = vrcp.f32 %v2562_v53 }
 0x53a   : > { %v4457_v54 = vpop.xlane.xlu0 %4456 }
 0x53b   : > { %v4458_v55 = vsub.f32 %v6742_v36, %v4457_v54 }
 0x53d   : > { %v4459_v57 = vmul.f32 1.442695, %v4458_v55 }
 0x53f   : > { %6994 = vpow2.f32 %v4459_v57 }
 0x541   : > { %v6993_v58 = vpop.eup %6992 }
 0x542   : > { %v2564_v59 = vmul.f32 %v6993_v58, %v6989_v35 }
 0x544   : > { %v2566_v61 = vsel %vm2101_vm4, %v2564_v59, 0 }
 0x545   : > { %v2634_v62 = vand.u32 4294901760, %v2566_v61 }
 0x547   : > { %v2635_v2 = vsub.f32 %v2566_v61, %v2634_v62 }
 0x549   : > { %v8032_v3 = vpop.eup %6994  ;;  %v2636_v4 = vand.u32 4294901760, %v2635_v2 }
 0x54a   : > { %v4461_v5 = vsel %vm2101_vm4, %v8032_v3, 0.0 }
 0x54b   : > { %4462 = vadd.xlane.f32.xlu0 %v4461_v5  ;;  %v2637_v8 = vsub.f32 %v2635_v2, %v2636_v4 }
 0x54d   : > { %v2638_v56 = vand.u32 4294901760, %v2637_v8 }
 0x54f   : > { %6458 = vmatmul.mubr.f32.vlgmr.msra.gmra.mrb[4].mxu1 %v2638_v56 }
 0x550   : > { %6461 = vmatpush3.msra.mxu1 %v2649_v0  ;;  %6462 = vmatprep.mubr.msk.f32.mxu1 %vm7314_vm0, %v7315_v1 }
 0x551   : > { %6465 = vmatprep.subr.mxu1 %v7315_v1 }
 0x557   : > { %6463 = vmatmul.mubr.f32.vlgmr.msra.gmra.mrb[4].mxu1 %v2634_v62 }
 0x558   : > { %6466 = vmatpush3.msra.mxu1 %v2646_v60  ;;  %6467 = vmatprep.mubr.msk.f32.mxu1 %vm7314_vm0, %v7315_v1 }
 0x559   : > { %6470 = vmatprep.subr.mxu1 %v7315_v1 }
 0x55f   : > { %6468 = vmatmul.mubr.f32.vlgmr.msra.gmra.mrb[4].mxu1 %v2635_v2 }
 0x560   : > { %6471 = vmatpush3.msra.mxu1 %v2569_v42  ;;  %6472 = vmatprep.mubr.msk.f32.mxu1 %vm7314_vm0, %v7315_v1 }
 0x561   : > { %4466 = vrot.lane.b32.xlu0 %v6739_v40, %s7325_s23  ;;  %6475 = vmatprep.subr.mxu1 %v7315_v1  ;;  %s5892_s23 = sshll.u32 %s8111_s11, 4  ;;  %s8133_s23 = int_to_ptr.vmem [resolvable:$true] %s5892_s23 }
 0x562   : > { %s7204_s21 = scalar_lea.vmem %s8133_s23, 128  ;;  %p7211_p4 = scmp.lt.s32.totalorder %s8133_s23, %s7209_s22 }
 0x563   : > { %p7205_p0 = scmp.ne.s32.totalorder %s8133_s23, %s7204_s21  ;;  %p7212_p11 = scmp.lt.s32.totalorder %s7210_s2, %s7204_s21 }
 0x565   : > { %5419 = vrot.lane.b32.xlu0 %v6739_v40, %s7326_s19  ;;  %p7206_p5 = pnand %p7205_p0, %p8244_p7  ;;  %p7213_p6 = por %p7212_p11, %p7211_p4 }
 0x567   : > { %6473 = vmatmul.mubr.f32.vlgmr.msra.gmra.mrb[4].mxu1 %v2636_v4  ;;  %p7207_p2 = pneg %p7206_p5 }
 0x568   : > { %6476 = vmatpush3.msra.mxu1 %v2647_v63  ;;  %6477 = vmatprep.mubr.msk.f32.mxu1 %vm7314_vm0, %v7315_v1 }
 0x569   : > { %6480 = vmatprep.subr.mxu1 %v7315_v1  ;;  %p7214_p10 = pnand %p7213_p6, %p7207_p2 }
 0x56f   : > { %6478 = vmatmul.mubr.f32.vlgmr.msra.gmra.mrb[4].mxu1 %v2634_v62 }
 0x570   : > { %6481 = vmatpush3.msra.mxu1 %v2569_v42  ;;  %6482 = vmatprep.mubr.msk.f32.mxu1 %vm7314_vm0, %v7315_v1 }
 0x571   : > { %6515 = vmatprep.subr.mxu1 %v7315_v1 }
 0x577   : > { %6483 = vmatmul.mubr.f32.vlgmr.msra.gmra.mrb[4].mxu1 %v2634_v62 }
 0x578   : > { %6517 = vmatprep.mubr.msk.f32.mxu1 %vm7314_vm0, %v7315_v1 }
 0x582   : > { %v5410_v37 = vpop.xlane.xlu0 %5409 }
 0x583   : > { %v5411_v45 = vsub.f32 %v6743_v44, %v5410_v37 }
 0x585   : > { %v5412_v9 = vmul.f32 1.442695, %v5411_v45 }
 0x587   : > { %6996 = vpow2.f32 %v5412_v9 }
 0x591   : > { %v8055_v11 = vpop.eup %6996 }
 0x592   : > { %v5414_v12 = vsel %vm2101_vm4, %v8055_v11, 0.0 }
 0x593   : > { %5415 = vadd.xlane.f32.xlu1 %v5414_v12 }
 0x5a3   : > { %v3509_v13 = vpop.xlane.xlu1 %3508 }
 0x5a4   : > { %6998 = vrcp.f32 %v3509_v13 }
 0x5a7   : > { %v3514_v14 = vpop.permute.xlu1 %3513 }
 0x5a8   : > { %v3520_v15 = vand.u32 4294901760, %v3514_v14 }
 0x5aa   : > { %6516 = vmatpush3.msra.mxu1 %v3520_v15  ;;  %v3597_v16 = vsub.f32 %v3514_v14, %v3520_v15 }
 0x5ab   : > { %6520 = vmatprep.subr.mxu1 %v7315_v1 }
 0x5ac   : > { %v3598_v18 = vand.u32 4294901760, %v3597_v16 }
 0x5ae   : > { %v6999_v17 = vpop.eup %6998  ;;  %v3599_v22 = vsub.f32 %v3597_v16, %v3598_v18 }
 0x5af   : > { %v3511_v29 = vmul.f32 %v6999_v17, %v8026_v51 }
 0x5b0   : > { %v3600_v25 = vand.u32 4294901760, %v3599_v22 }
 0x5b1   : > { %v3517_v19 = vsel %vm2101_vm4, %v3511_v29, 0 }
 0x5b2   : > { %v3585_v20 = vand.u32 4294901760, %v3517_v19 }
 0x5b4   : > { %v3586_v21 = vsub.f32 %v3517_v19, %v3585_v20 }
 0x5b6   : > { %v3587_v23 = vand.u32 4294901760, %v3586_v21 }
 0x5b8   : > { %v3588_v24 = vsub.f32 %v3586_v21, %v3587_v23 }
 0x5ba   : > { %v3589_v26 = vand.u32 4294901760, %v3588_v24 }
 0x5bc   : > { %6518 = vmatmul.mubr.f32.vlgmr.msra.gmra.mrb[6].mxu1 %v3589_v26 }
 0x5bd   : > { %6521 = vmatpush3.msra.mxu1 %v3600_v25  ;;  %6522 = vmatprep.mubr.msk.f32.mxu1 %vm7314_vm0, %v7315_v1 }
 0x5be   : > { %6525 = vmatprep.subr.mxu1 %v7315_v1 }
 0x5c4   : > { %6523 = vmatmul.mubr.f32.vlgmr.msra.gmra.mrb[6].mxu1 %v3585_v20 }
 0x5c5   : > { %6526 = vmatpush3.msra.mxu1 %v3597_v16  ;;  %6527 = vmatprep.mubr.msk.f32.mxu1 %vm7314_vm0, %v7315_v1 }
 0x5c6   : > { %6530 = vmatprep.subr.mxu1 %v7315_v1 }
 0x5cc   : > { %6528 = vmatmul.mubr.f32.vlgmr.msra.gmra.mrb[6].mxu1 %v3586_v21 }
 0x5cd   : > { %6531 = vmatpush3.msra.mxu1 %v3520_v15  ;;  %6532 = vmatprep.mubr.msk.f32.mxu1 %vm7314_vm0, %v7315_v1 }
 0x5ce   : > { %6535 = vmatprep.subr.mxu1 %v7315_v1 }
 0x5d4   : > { %6533 = vmatmul.mubr.f32.vlgmr.msra.gmra.mrb[6].mxu1 %v3587_v23 }
 0x5d5   : > { %6536 = vmatpush3.msra.mxu1 %v3598_v18  ;;  %6537 = vmatprep.mubr.msk.f32.mxu1 %vm7314_vm0, %v7315_v1 }
 0x5d6   : > { %6540 = vmatprep.subr.mxu1 %v7315_v1 }
 0x5d8   : > { %v4463_v27 = vpop.xlane.xlu0 %4462 }
 0x5d9   : > { %7000 = vrcp.f32 %v4463_v27 }
 0x5dc   : > { %6538 = vmatmul.mubr.f32.vlgmr.msra.gmra.mrb[6].mxu1 %v3585_v20  ;;  %v4467_v28 = vpop.permute.xlu0 %4466 }
 0x5dd   : > { %6541 = vmatpush3.msra.mxu1 %v3520_v15  ;;  %6542 = vmatprep.mubr.msk.f32.mxu1 %vm7314_vm0, %v7315_v1  ;;  %v4473_v30 = vand.u32 4294901760, %v4467_v28 }
 0x5de   : > { %6575 = vmatprep.subr.mxu1 %v7315_v1 }
 0x5df   : > { %v4550_v33 = vsub.f32 %v4467_v28, %v4473_v30 }
 0x5e0   : > { %v5420_v42 = vpop.permute.xlu0 %5419 }
 0x5e1   : > { %v4551_v36 = vand.u32 4294901760, %v4550_v33  ;;  %v5426_v43 = vand.u32 4294901760, %v5420_v42 }
 0x5e3   : > { %v7001_v31 = vpop.eup %7000  ;;  %v4552_v39 = vsub.f32 %v4550_v33, %v4551_v36  ;;  %v5503_v47 = vsub.f32 %v5420_v42, %v5426_v43 }
 0x5e4   : > { %v4465_v32 = vmul.f32 %v7001_v31, %v8032_v3  ;;  %6543 = vmatmul.mubr.f32.vlgmr.msra.gmra.mrb[6].mxu1 %v3585_v20 }
 0x5e5   : > { %6576 = vmatpush3.msra.mxu1 %v4473_v30  ;;  %6577 = vmatprep.mubr.msk.f32.mxu1 %vm7314_vm0, %v7315_v1  ;;  %v4553_v41 = vand.u32 4294901760, %v4552_v39  ;;  %v5504_v51 = vand.u32 4294901760, %v5503_v47 }
 0x5e6   : > { %6580 = vmatprep.subr.mxu1 %v7315_v1  ;;  %v4470_v34 = vsel %vm2101_vm4, %v4465_v32, 0 }
 0x5e7   : > { %v4538_v35 = vand.u32 4294901760, %v4470_v34  ;;  %v5505_v54 = vsub.f32 %v5503_v47, %v5504_v51 }
 0x5e9   : > { %v4539_v38 = vsub.f32 %v4470_v34, %v4538_v35  ;;  %v5506_v58 = vand.u32 4294901760, %v5505_v54 }
 0x5eb   : > { %v4540_v10 = vand.u32 4294901760, %v4539_v38 }
 0x5ed   : > { %v4541_v7 = vsub.f32 %v4539_v38, %v4540_v10 }
 0x5ef   : > { %v4542_v40 = vand.u32 4294901760, %v4541_v7 }
 0x5f1   : > { %6578 = vmatmul.mubr.f32.vlgmr.msra.gmra.mrb[8].mxu1 %v4542_v40 }
 0x5f2   : > { %6581 = vmatpush3.msra.mxu1 %v4553_v41  ;;  %6582 = vmatprep.mubr.msk.f32.mxu1 %vm7314_vm0, %v7315_v1 }
 0x5f3   : > { %6585 = vmatprep.subr.mxu1 %v7315_v1 }
 0x5f9   : > { %6583 = vmatmul.mubr.f32.vlgmr.msra.gmra.mrb[8].mxu1 %v4538_v35 }
 0x5fa   : > { %6586 = vmatpush3.msra.mxu1 %v4550_v33  ;;  %6587 = vmatprep.mubr.msk.f32.mxu1 %vm7314_vm0, %v7315_v1 }
 0x5fb   : > { %6590 = vmatprep.subr.mxu1 %v7315_v1 }
 0x601   : > { %6588 = vmatmul.mubr.f32.vlgmr.msra.gmra.mrb[8].mxu1 %v4539_v38 }
 0x602   : > { %6591 = vmatpush3.msra.mxu1 %v4473_v30  ;;  %6592 = vmatprep.mubr.msk.f32.mxu1 %vm7314_vm0, %v7315_v1 }
 0x603   : > { %6595 = vmatprep.subr.mxu1 %v7315_v1 }
 0x609   : > { %6593 = vmatmul.mubr.f32.vlgmr.msra.gmra.mrb[8].mxu1 %v4540_v10 }
 0x60a   : > { %6596 = vmatpush3.msra.mxu1 %v4551_v36  ;;  %6597 = vmatprep.mubr.msk.f32.mxu1 %vm7314_vm0, %v7315_v1 }
 0x60b   : > { %6600 = vmatprep.subr.mxu1 %v7315_v1 }
 0x611   : > { %6598 = vmatmul.mubr.f32.vlgmr.msra.gmra.mrb[8].mxu1 %v4538_v35 }
 0x612   : > { %6601 = vmatpush3.msra.mxu1 %v4473_v30  ;;  %6602 = vmatprep.mubr.msk.f32.mxu1 %vm7314_vm0, %v7315_v1 }
 0x613   : > { %6635 = vmatprep.subr.mxu1 %v7315_v1 }
 0x619   : > { %6603 = vmatmul.mubr.f32.vlgmr.msra.gmra.mrb[8].mxu1 %v4538_v35 }
 0x61a   : > { %6636 = vmatpush3.msra.mxu1 %v5426_v43  ;;  %6637 = vmatprep.mubr.msk.f32.mxu1 %vm7314_vm0, %v7315_v1 }
 0x61b   : > { %6640 = vmatprep.subr.mxu1 %v7315_v1 }
 0x620   : > { %v5416_v44 = vpop.xlane.xlu1 %5415 }
 0x621   : > { %7002 = vrcp.f32 %v5416_v44 }
 0x62b   : > { %v7003_v46 = vpop.eup %7002 }
 0x62c   : > { %v5418_v48 = vmul.f32 %v7003_v46, %v8055_v11 }
 0x62e   : > { %v5423_v49 = vsel %vm2101_vm4, %v5418_v48, 0 }
 0x62f   : > { %v5491_v50 = vand.u32 4294901760, %v5423_v49 }
 0x631   : > { %v5492_v52 = vsub.f32 %v5423_v49, %v5491_v50 }
 0x633   : > { %v5493_v53 = vand.u32 4294901760, %v5492_v52 }
 0x635   : > { %v5494_v55 = vsub.f32 %v5492_v52, %v5493_v53 }
 0x637   : > { %v5495_v57 = vand.u32 4294901760, %v5494_v55 }
 0x639   : > { %6638 = vmatmul.mubr.f32.vlgmr.msra.gmra.mrb[10].mxu1 %v5495_v57 }
 0x63a   : > { %6641 = vmatpush3.msra.mxu1 %v5506_v58  ;;  %6642 = vmatprep.mubr.msk.f32.mxu1 %vm7314_vm0, %v7315_v1 }
 0x63b   : > { %6645 = vmatprep.subr.mxu1 %v7315_v1 }
 0x641   : > { %6643 = vmatmul.mubr.f32.vlgmr.msra.gmra.mrb[10].mxu1 %v5491_v50 }
 0x642   : > { %6646 = vmatpush3.msra.mxu1 %v5503_v47  ;;  %6647 = vmatprep.mubr.msk.f32.mxu1 %vm7314_vm0, %v7315_v1 }
 0x643   : > { %6650 = vmatprep.subr.mxu1 %v7315_v1 }
 0x649   : > { %6648 = vmatmul.mubr.f32.vlgmr.msra.gmra.mrb[10].mxu1 %v5492_v52 }
 0x64a   : > { %6651 = vmatpush3.msra.mxu1 %v5426_v43  ;;  %v3010_v59 = vpop.f32.mrb[4].mxu1  ;;  %6652 = vmatprep.mubr.msk.f32.mxu1 %vm7314_vm0, %v7315_v1 }
 0x64b   : > { %3014 = vst.msk [vmem:[%s8111_s11] sm:$0xff] %vm2101_vm4, %v3010_v59  ;;  %v6484_v60 = vpop.f32.mrb[5].mxu1  ;;  %6655 = vmatprep.subr.mxu1 %v7315_v1 }
 0x651   : > { %6653 = vmatmul.mubr.f32.vlgmr.msra.gmra.mrb[10].mxu1 %v5493_v53 }
 0x652   : > { %6656 = vmatpush3.msra.mxu1 %v5504_v51  ;;  %6657 = vmatprep.mubr.msk.f32.mxu1 %vm7314_vm0, %v7315_v1 }
 0x653   : > { %6660 = vmatprep.subr.mxu1 %v7315_v1 }
 0x659   : > { %6658 = vmatmul.mubr.f32.vlgmr.msra.gmra.mrb[10].mxu1 %v5491_v50 }
 0x65a   : > { %6661 = vmatpush3.msra.mxu1 %v5426_v43  ;;  %6662 = vmatprep.mubr.msk.f32.mxu1 %vm7314_vm0, %v7315_v1 }
 0x661   : > { %6663 = vmatmul.mubr.f32.vlgmr.msra.gmra.mrb[10].mxu1 %v5491_v50 }
 0x6b7   : > { %v3961_v61 = vpop.f32.mrb[6].mxu1 }
 0x6b8   : > { %v6544_v62 = vpop.f32.mrb[7].mxu1  ;;  %3966 = vrot.lane.b32.xlu0 %v3961_v61, %s7319_s4 }
 0x6ec   : > { %v4914_v63 = vpop.f32.mrb[8].mxu1 }
 0x6ed   : > { %4919 = vrot.lane.b32.xlu0 %v4914_v63, %s7322_s28  ;;  %v6604_v2 = vpop.f32.mrb[9].mxu1  ;;  %s8242_s28 = sld [smem:[#allocation32_spill]] }
 0x6f3   : > { %s8243_s12 = smov %s8242_s28  ;;  %s8131_s6 = scalar_lea.hbm %s8242_s28, %s6110_s5 }
 0x72a   : > { %v3967_v3 = vpop.permute.xlu0 %3966 }
 0x72b   : > { %3970 = vst.msk [vmem:[%s8111_s11] sm:$0xff] %vm3969_vm5, %v3967_v3 }
 0x734   : > { %v5867_v4 = vpop.f32.mrb[10].mxu1 }
 0x735   : > { %5872 = vrot.lane.b32.xlu0 %v5867_v4, %s7324_s7  ;;  %v6664_v1 = vpop.f32.mrb[11].mxu1  ;;  %s5878_s7 = scalar_lea.sflag [#allocation4], %s7669_s20 }
 0x75f   : > { %v4920_v5 = vpop.permute.xlu0 %4919 }
 0x760   : > { %4923 = vst.msk [vmem:[%s8111_s11] sm:$0xff] %vm4922_vm6, %v4920_v5 }
 0x7a7   : > { %v5873_v6 = vpop.permute.xlu0 %5872 }
 0x7a8   : > { %5876 = vst.msk [vmem:[%s8111_s11] sm:$0xff] %vm5875_vm7, %v5873_v6 }
 0x7a9   : > { %7217 = shalt.err (!%p7214_p10)
}
 0x7aa   : > { %s7218_s20 = scalar_lea.hbm %s8131_s6, 128  ;;  %s7222_s17 = scalar_lea.hbm %s8243_s12, 256 }
 0x7ab   : > { %p7219_p1 = scmp.ne.s32.totalorder %s8131_s6, %s7218_s20  ;;  %p7223_p3 = scmp.lt.u32.totalorder %s8131_s6, %s8243_s12 }
 0x7ac   : > { %p7224_p12 = scmp.lt.u32.totalorder %s7222_s17, %s7218_s20  ;;  %p7226_p0 = scmp.lt.u32.totalorder %s7218_s20, %s8131_s6 }
 0x7ad   : > { %p7220_p9 = pnand %p7219_p1, %p8244_p7 }
 0x7ae   : > { %p7225_p13 = por %p7224_p12, %p7223_p3 }
 0x7af   : > { %p7221_p8 = pneg %p7220_p9 }
 0x7b0   : > { %p7227_p5 = por %p7226_p0, %p7225_p13 }
 0x7b2   : > { %p7228_p2 = pnand %p7227_p5, %p7221_p8 }
 0x7b4   : > { %7231 = shalt.err (!%p7228_p2)
}
 0x7b5   : > { %6878 = dma.vmem_to_hbm [thread:$0]  (%p8244_p7), %s8133_s23, 128, %s8131_s6, %s5878_s7  }
 0x7b6 PF: > { %s5904_s5 = sand.u32 1, %s7282_s25   ;;  %p8245_p4 = scmp.ne.s32.totalorder %s8226_s16, 0 }
 0x7b7   : > { %p8246_p11 = scmp.ge.s32.totalorder %s7302_s30, 2  ;;  %s5905_s4 = scalar_lea.sflag [#allocation4], %s5904_s5 }
 0x7b9   : > { %p6904_p6 = pnand %p8246_p11, %p8245_p4 }
 0x7bb   : > { %7277 = dma.done.wait (!%p6904_p6), %s5905_s4, 128  }
 0x7bc   : > { %7279 = vsyncadd (!%p6904_p6), %s5905_s4, 4294967168  ;;  %s34_s30 = sadd.s32 1, %s7302_s30   ;;  %s8247_s25 = smov %s7286_s26 }
 0x7bd   : > { %p31_p10 = scmp.ge.s32.totalorder %s34_s30, 4   ;;  %s8248_s26 = smov %s7290_s27 }
 0x7be   : > { %s8249_s27 = smov %s7589_s24  ;;  %s8250_s28 = smov %s7298_s29 }
 0x7bf   : > { %s8251_s29 = smov %s8253_s13  ;;  %33 = sbr.rel (!%p31_p10) target bundleno = 22 (0x16), region = 159 }
 0x7c6   :  { %5910 = vsyncpa [#allocation3], 1 }
 0x7c7   :  { %5912 = vsyncpa [#allocation3 + $0x1], 1 }
 0x7c8   :  { %5913 = vsyncpa [#allocation6], 1 }
 0x7c9   :  { %5915 = vsyncpa [#allocation6 + $0x1], 1 }
 0x7ca   :  { %5916 = vsyncpa [#allocation9], 1 }
 0x7cb   :  { %5917 = vsyncpa [#allocation12], 1 }
 0x7cc   :  { %5918 = vsyncpa [#allocation4], 1 }
 0x7cd   :  { %5920 = vsyncpa [#allocation4 + $0x1], 1 }

</bundles_post_ra>
